<compile_context>
chip_gen: v5e
topology: v5e:2x2
jax: 0.10.0
libtpu: 0.0.40
codegen_flags: <defaults>
</compile_context>

<pallas_src>
import math

import jax
import jax.numpy as jnp
from jax.experimental import pallas as pl
from jax.experimental.pallas import tpu as pltpu

GAME_BOARD_SIZE = 16
HIDDEN = 400
LATENT = 20

# Padded / packed lane layout.
HID_PAD = 512                      # 400 -> 512 (4 x 128 lanes), zero-padded
SLAB = 128                         # lane-dense input/output slab width
X_LO, X_HI = 0, GAME_BOARD_SIZE                 # x lives in input lanes 0:16
EPS_LO, EPS_HI = GAME_BOARD_SIZE, GAME_BOARD_SIZE + LATENT   # eps in 16:36
REC_LO, REC_HI = 0, GAME_BOARD_SIZE             # recon in output lanes 0:16
MU_LO, MU_HI = 16, 16 + LATENT                  # mu in output lanes 16:36
LV_LO, LV_HI = MU_HI, MU_HI + LATENT            # logvar in output lanes 36:56


def _vae_dqn_kernel(slab_ref, w1_ref, b1_ref, wms_ref, bout_ref,
                    wd1_ref, bd1_ref, wd2_ref, out_ref):
    slab = slab_ref[...]                                     # (tm, 128)

    # encoder_l1: Linear(16, 400) + ReLU, padded to K=128 / N=512.
    # (eps / pad lanes of the slab hit zero rows of w1 -> contribute 0.)
    h1 = jnp.dot(slab, w1_ref[...], preferred_element_type=jnp.float32)
    h1 = jnp.maximum(h1 + b1_ref[...], 0.0)                  # (tm, 512)

    # fused fc_mu || fc_sigma projection, already placed at output lanes
    # 16:36 (mu) and 36:56 (logvar); bd2 is folded into lanes 0:16 of bout.
    ml = jnp.dot(h1, wms_ref[...], preferred_element_type=jnp.float32)
    ml = ml + bout_ref[...]                                  # (tm, 128)

    mu = ml[:, MU_LO:MU_HI]                                  # (tm, 20)
    logvar = ml[:, LV_LO:LV_HI]                              # (tm, 20)
    eps = slab[:, EPS_LO:EPS_HI]                             # (tm, 20)

    # reparameterize: z = eps * exp(0.5*logvar) + mu
    z = eps * jnp.exp(0.5 * logvar) + mu                     # (tm, 20)

    # decoder_l1: Linear(20, 400) + ReLU (N padded to 512).
    h3 = jnp.dot(z, wd1_ref[...], preferred_element_type=jnp.float32)
    h3 = jnp.maximum(h3 + bd1_ref[...], 0.0)                 # (tm, 512)

    # decoder_l2: Linear(400, 16) placed at output lanes 0:16 (bias already
    # folded into bout above, and ml is zero on lanes 0:16 apart from bd2).
    recon_wide = jnp.dot(h3, wd2_ref[...],
                         preferred_element_type=jnp.float32)  # (tm, 128)

    # Single lane-dense output slab: recon | mu | logvar | zero pad.
    out_ref[...] = recon_wide + ml


def prepare_params(params):
    """One-time transform of PyTorch-layout params into padded/fused kernel
    weights.  Call once at init; reuse for every forward."""
    (w1, b1, wmu, bmu, wsig, bsig, wd1, bd1, wd2, bd2) = (
        jnp.asarray(p, jnp.float32) for p in params)

    # encoder_l1: (128, 512); rows 0:16 = W1^T, rest zero.
    w1p = jnp.zeros((SLAB, HID_PAD), jnp.float32)
    w1p = w1p.at[X_LO:X_HI, :HIDDEN].set(w1.T)
    b1p = jnp.zeros((1, HID_PAD), jnp.float32).at[0, :HIDDEN].set(b1)

    # fused mu||sigma projection, written directly in output-lane layout.
    wms = jnp.zeros((HID_PAD, SLAB), jnp.float32)
    wms = wms.at[:HIDDEN, MU_LO:MU_HI].set(wmu.T)
    wms = wms.at[:HIDDEN, LV_LO:LV_HI].set(wsig.T)

    # combined output bias: bd2 | bmu | bsig | 0 (decoder_l2 bias folded in).
    bout = jnp.zeros((1, SLAB), jnp.float32)
    bout = bout.at[0, REC_LO:REC_HI].set(bd2)
    bout = bout.at[0, MU_LO:MU_HI].set(bmu)
    bout = bout.at[0, LV_LO:LV_HI].set(bsig)

    # decoder_l1: (20, 512).
    wd1p = jnp.zeros((LATENT, HID_PAD), jnp.float32).at[:, :HIDDEN].set(wd1.T)
    bd1p = jnp.zeros((1, HID_PAD), jnp.float32).at[0, :HIDDEN].set(bd1)

    # decoder_l2: (512, 128); cols 0:16 = Wd2^T, rest zero (bias in bout).
    wd2p = jnp.zeros((HID_PAD, SLAB), jnp.float32)
    wd2p = wd2p.at[:HIDDEN, REC_LO:REC_HI].set(wd2.T)

    return (w1p, b1p, wms, bout, wd1p, bd1p, wd2p)


def _round_up(n, m):
    return ((n + m - 1) // m) * m


def _pick_tiling(rows):
    # Two parallel grid steps so v7x's second TensorCore gets work; on
    # single-TC v5e/v6e the extra step is ~0.35us.  Cap the tile for large
    # batches so h1/h3 live ranges stay reasonable.
    if rows <= 512:
        rp = _round_up(max(rows, 16), 16)
        return rp, rp // 2
    tm = 256
    return _round_up(rows, tm), tm


def vae_dqn_forward(x, eps, prepared_params, *, tm=None):
    """x: any shape flattening to (R, 16); eps: (R, 20) standard normals.
    prepared_params: output of prepare_params()."""
    x2 = x.reshape(-1, GAME_BOARD_SIZE).astype(jnp.float32)
    rows = x2.shape[0]
    assert eps.shape == (rows, LATENT)

    if tm is None:
        rows_p, tm = _pick_tiling(rows)
    else:
        assert tm % 8 == 0, "tile row count must be a multiple of 8"
        rows_p = _round_up(rows, tm)

    # Lane-dense input slab: x -> lanes 0:16, eps -> lanes 16:36, rest zero.
    slab = jnp.zeros((rows_p, SLAB), jnp.float32)
    slab = slab.at[:rows, X_LO:X_HI].set(x2)
    slab = slab.at[:rows, EPS_LO:EPS_HI].set(eps.astype(jnp.float32))

    full = lambda i: (0, 0)        # weights/biases resident across the grid
    rowmap = lambda i: (i, 0)      # batch-tiled arrays

    grid = (rows_p // tm,)

    out = pl.pallas_call(
        _vae_dqn_kernel,
        out_shape=jax.ShapeDtypeStruct((rows_p, SLAB), jnp.float32),
        grid_spec=pltpu.PrefetchScalarGridSpec(
            num_scalar_prefetch=0,
            grid=grid,
            in_specs=[
                pl.BlockSpec((tm, SLAB), rowmap),          # packed x|eps slab
                pl.BlockSpec((SLAB, HID_PAD), full),       # W1 (padded)
                pl.BlockSpec((1, HID_PAD), full),          # b1 (padded)
                pl.BlockSpec((HID_PAD, SLAB), full),       # fused Wmu||Wsig
                pl.BlockSpec((1, SLAB), full),             # bd2|bmu|bsig
                pl.BlockSpec((LATENT, HID_PAD), full),     # Wd1 (padded)
                pl.BlockSpec((1, HID_PAD), full),          # bd1 (padded)
                pl.BlockSpec((HID_PAD, SLAB), full),       # Wd2 (padded)
            ],
            out_specs=pl.BlockSpec((tm, SLAB), rowmap),    # recon|mu|logvar
        ),
        compiler_params=pltpu.CompilerParams(
            dimension_semantics=("parallel",),
        ),
    )(slab, *prepared_params)

    recon = out[:rows, REC_LO:REC_HI]
    mu = out[:rows, MU_LO:MU_HI]
    logvar = out[:rows, LV_LO:LV_HI]
    return recon, mu, logvar


def _init_linear(key, out_features, in_features):
    """Deterministic init mimicking torch.nn.Linear default U(-1/sqrt(fan_in), +)."""
    kw, kb = jax.random.split(key)
    bound = 1.0 / math.sqrt(in_features)
    w = jax.random.uniform(kw, (out_features, in_features),
                           minval=-bound, maxval=bound, dtype=jnp.float32)
    b = jax.random.uniform(kb, (out_features,),
                           minval=-bound, maxval=bound, dtype=jnp.float32)
    return w, b


def init_vae_dqn_params(key):
    keys = jax.random.split(key, 5)
    w1, b1 = _init_linear(keys[0], HIDDEN, GAME_BOARD_SIZE)       # encoder_l1
    wmu, bmu = _init_linear(keys[1], LATENT, HIDDEN)              # fc_mu
    wsig, bsig = _init_linear(keys[2], LATENT, HIDDEN)            # fc_sigma
    wd1, bd1 = _init_linear(keys[3], HIDDEN, LATENT)              # decoder_l1
    wd2, bd2 = _init_linear(keys[4], GAME_BOARD_SIZE, HIDDEN)     # decoder_l2
    return (w1, b1, wmu, bmu, wsig, bsig, wd1, bd1, wd2, bd2)


def _reference_forward(x, eps, params):
    """Pure-JAX reference for correctness checking (PyTorch semantics)."""
    (w1, b1, wmu, bmu, wsig, bsig, wd1, bd1, wd2, bd2) = params
    x2 = x.reshape(-1, GAME_BOARD_SIZE).astype(jnp.float32)
    h1 = jnp.maximum(x2 @ w1.T + b1, 0.0)
    mu = h1 @ wmu.T + bmu
    logvar = h1 @ wsig.T + bsig
    z = eps * jnp.exp(0.5 * logvar) + mu
    h3 = jnp.maximum(z @ wd1.T + bd1, 0.0)
    recon = h3 @ wd2.T + bd2
    return recon, mu, logvar


if __name__ == "__main__":
    key = jax.random.PRNGKey(0)
    k_param, k_x, k_eps = jax.random.split(key, 3)

    params = init_vae_dqn_params(k_param)
    prepared = prepare_params(params)     # one-time pad/transpose/fuse

    # NCHW-style input, as the PyTorch module would receive; view(-1, 16)
    # inside the wrapper gives 128 rows of 16 features.
    x = jax.random.normal(k_x, (2, 4, 16, GAME_BOARD_SIZE), dtype=jnp.float32)
    n_rows = x.size // GAME_BOARD_SIZE
    # eps plays the role of torch.randn_like(std) in reparameterize.
    # TODO(synk): torch draws eps inside forward; here it is supplied
    # externally so the kernel stays deterministic.
    eps = jax.random.normal(k_eps, (n_rows, LATENT), dtype=jnp.float32)

    recon, mu, logvar = vae_dqn_forward(x, eps, prepared)
    jax.block_until_ready((recon, mu, logvar))

    # Sanity check against the pure-JAX reference.
    r_ref, mu_ref, lv_ref = _reference_forward(x, eps, params)
    assert recon.shape == (n_rows, GAME_BOARD_SIZE)
    assert mu.shape == (n_rows, LATENT) and logvar.shape == (n_rows, LATENT)
    assert jnp.allclose(recon, r_ref, atol=1e-4, rtol=1e-4)
    assert jnp.allclose(mu, mu_ref, atol=1e-4, rtol=1e-4)
    assert jnp.allclose(logvar, lv_ref, atol=1e-4, rtol=1e-4)

    print("KERNEL_OK")
</pallas_src>

<mosaic_0001>
module attributes {stable_mosaic.version = 11 : i64} {
  func.func @_vae_dqn_kernel(%arg0: i32, %arg1: memref<64x128xf32, #tpu.memory_space<vmem>>, %arg2: memref<128x512xf32, #tpu.memory_space<vmem>>, %arg3: memref<1x512xf32, #tpu.memory_space<vmem>>, %arg4: memref<512x128xf32, #tpu.memory_space<vmem>>, %arg5: memref<1x128xf32, #tpu.memory_space<vmem>>, %arg6: memref<20x512xf32, #tpu.memory_space<vmem>>, %arg7: memref<1x512xf32, #tpu.memory_space<vmem>>, %arg8: memref<512x128xf32, #tpu.memory_space<vmem>>, %arg9: memref<64x128xf32, #tpu.memory_space<vmem>>) attributes {dimension_semantics = [#tpu.dimension_semantics<parallel>], iteration_bounds = array<i64: 2>, scalar_prefetch = 0 : i64, scratch_operands = 0 : i64, tpu.core_type = #tpu.core_type<tc>, window_params = [{transform_indices = @transform_0, window_bounds = array<i64: 64, 128>}, {pipeline_mode = #tpu.pipeline_mode<synchronous>, transform_indices = @transform_1, window_bounds = array<i64: 128, 512>}, {pipeline_mode = #tpu.pipeline_mode<synchronous>, transform_indices = @transform_2, window_bounds = array<i64: 1, 512>}, {pipeline_mode = #tpu.pipeline_mode<synchronous>, transform_indices = @transform_3, window_bounds = array<i64: 512, 128>}, {pipeline_mode = #tpu.pipeline_mode<synchronous>, transform_indices = @transform_4, window_bounds = array<i64: 1, 128>}, {pipeline_mode = #tpu.pipeline_mode<synchronous>, transform_indices = @transform_5, window_bounds = array<i64: 20, 512>}, {pipeline_mode = #tpu.pipeline_mode<synchronous>, transform_indices = @transform_6, window_bounds = array<i64: 1, 512>}, {pipeline_mode = #tpu.pipeline_mode<synchronous>, transform_indices = @transform_7, window_bounds = array<i64: 512, 128>}, {transform_indices = @transform_8, window_bounds = array<i64: 64, 128>}]} {
    %c0 = arith.constant 0 : index
    %c0_0 = arith.constant 0 : index
    %0 = vector.load %arg1[%c0, %c0_0] : memref<64x128xf32, #tpu.memory_space<vmem>>, vector<64x128xf32>
    %c0_1 = arith.constant 0 : index
    %c0_2 = arith.constant 0 : index
    %1 = vector.load %arg2[%c0_1, %c0_2] : memref<128x512xf32, #tpu.memory_space<vmem>>, vector<128x512xf32>
    %cst = arith.constant dense<0.000000e+00> : vector<64x512xf32>
    %2 = tpu.matmul %0, %1, %cst {dimension_numbers = #tpu.dot_dimension_numbers<[1], [0], [0], [1], [0, 0, 1, 1], [], []>} : vector<64x128xf32>, vector<128x512xf32>, vector<64x512xf32> -> vector<64x512xf32>
    %c0_3 = arith.constant 0 : index
    %c0_4 = arith.constant 0 : index
    %3 = vector.load %arg3[%c0_3, %c0_4] : memref<1x512xf32, #tpu.memory_space<vmem>>, vector<1x512xf32>
    %4 = vector.broadcast %3 : vector<1x512xf32> to vector<64x512xf32>
    %5 = arith.addf %2, %4 : vector<64x512xf32>
    %cst_5 = arith.constant 0.000000e+00 : f32
    %6 = vector.broadcast %cst_5 : f32 to vector<64x512xf32>
    %7 = arith.maximumf %5, %6 : vector<64x512xf32>
    %c0_6 = arith.constant 0 : index
    %c0_7 = arith.constant 0 : index
    %8 = vector.load %arg4[%c0_6, %c0_7] : memref<512x128xf32, #tpu.memory_space<vmem>>, vector<512x128xf32>
    %cst_8 = arith.constant dense<0.000000e+00> : vector<64x128xf32>
    %9 = tpu.matmul %7, %8, %cst_8 {dimension_numbers = #tpu.dot_dimension_numbers<[1], [0], [0], [1], [0, 0, 1, 1], [], []>} : vector<64x512xf32>, vector<512x128xf32>, vector<64x128xf32> -> vector<64x128xf32>
    %c0_9 = arith.constant 0 : index
    %c0_10 = arith.constant 0 : index
    %10 = vector.load %arg5[%c0_9, %c0_10] : memref<1x128xf32, #tpu.memory_space<vmem>>, vector<1x128xf32>
    %11 = vector.broadcast %10 : vector<1x128xf32> to vector<64x128xf32>
    %12 = arith.addf %9, %11 : vector<64x128xf32>
    %13 = vector.extract_strided_slice %12 {offsets = [0, 16], sizes = [64, 20], strides = [1, 1]} : vector<64x128xf32> to vector<64x20xf32>
    %14 = vector.extract_strided_slice %12 {offsets = [0, 36], sizes = [64, 20], strides = [1, 1]} : vector<64x128xf32> to vector<64x20xf32>
    %15 = vector.extract_strided_slice %0 {offsets = [0, 16], sizes = [64, 20], strides = [1, 1]} : vector<64x128xf32> to vector<64x20xf32>
    %cst_11 = arith.constant 5.000000e-01 : f32
    %16 = vector.broadcast %cst_11 : f32 to vector<64x20xf32>
    %17 = arith.mulf %16, %14 : vector<64x20xf32>
    %18 = math.exp %17 : vector<64x20xf32>
    %19 = arith.mulf %15, %18 : vector<64x20xf32>
    %20 = arith.addf %19, %13 : vector<64x20xf32>
    %c0_12 = arith.constant 0 : index
    %c0_13 = arith.constant 0 : index
    %21 = vector.load %arg6[%c0_12, %c0_13] : memref<20x512xf32, #tpu.memory_space<vmem>>, vector<20x512xf32>
    %cst_14 = arith.constant dense<0.000000e+00> : vector<64x512xf32>
    %22 = tpu.matmul %20, %21, %cst_14 {dimension_numbers = #tpu.dot_dimension_numbers<[1], [0], [0], [1], [0, 0, 1, 1], [], []>} : vector<64x20xf32>, vector<20x512xf32>, vector<64x512xf32> -> vector<64x512xf32>
    %c0_15 = arith.constant 0 : index
    %c0_16 = arith.constant 0 : index
    %23 = vector.load %arg7[%c0_15, %c0_16] : memref<1x512xf32, #tpu.memory_space<vmem>>, vector<1x512xf32>
    %24 = vector.broadcast %23 : vector<1x512xf32> to vector<64x512xf32>
    %25 = arith.addf %22, %24 : vector<64x512xf32>
    %cst_17 = arith.constant 0.000000e+00 : f32
    %26 = vector.broadcast %cst_17 : f32 to vector<64x512xf32>
    %27 = arith.maximumf %25, %26 : vector<64x512xf32>
    %c0_18 = arith.constant 0 : index
    %c0_19 = arith.constant 0 : index
    %28 = vector.load %arg8[%c0_18, %c0_19] : memref<512x128xf32, #tpu.memory_space<vmem>>, vector<512x128xf32>
    %cst_20 = arith.constant dense<0.000000e+00> : vector<64x128xf32>
    %29 = tpu.matmul %27, %28, %cst_20 {dimension_numbers = #tpu.dot_dimension_numbers<[1], [0], [0], [1], [0, 0, 1, 1], [], []>} : vector<64x512xf32>, vector<512x128xf32>, vector<64x128xf32> -> vector<64x128xf32>
    %30 = arith.addf %29, %12 : vector<64x128xf32>
    %c0_21 = arith.constant 0 : index
    %c0_22 = arith.constant 0 : index
    %31 = vector.load %arg9[%c0_21, %c0_22] : memref<64x128xf32, #tpu.memory_space<vmem>>, vector<64x128xf32>
    tpu.vector_store %arg9[%c0_21, %c0_22], %30 {strides = array<i32>} : memref<64x128xf32, #tpu.memory_space<vmem>>, vector<64x128xf32>,
    return
  }
  func.func @transform_0(%arg0: i32) -> (i32, i32) {
    %c0_i32 = arith.constant 0 : i32
    %c0_i32_0 = arith.constant 0 : i32
    return %arg0, %c0_i32 : i32, i32
  }
  func.func @transform_1(%arg0: i32) -> (i32, i32) {
    %c0_i32 = arith.constant 0 : i32
    %c0_i32_0 = arith.constant 0 : i32
    %c0_i32_1 = arith.constant 0 : i32
    return %c0_i32, %c0_i32_0 : i32, i32
  }
  func.func @transform_2(%arg0: i32) -> (i32, i32) {
    %c0_i32 = arith.constant 0 : i32
    %c0_i32_0 = arith.constant 0 : i32
    %c0_i32_1 = arith.constant 0 : i32
    return %c0_i32, %c0_i32_0 : i32, i32
  }
  func.func @transform_3(%arg0: i32) -> (i32, i32) {
    %c0_i32 = arith.constant 0 : i32
    %c0_i32_0 = arith.constant 0 : i32
    %c0_i32_1 = arith.constant 0 : i32
    return %c0_i32, %c0_i32_0 : i32, i32
  }
  func.func @transform_4(%arg0: i32) -> (i32, i32) {
    %c0_i32 = arith.constant 0 : i32
    %c0_i32_0 = arith.constant 0 : i32
    %c0_i32_1 = arith.constant 0 : i32
    return %c0_i32, %c0_i32_0 : i32, i32
  }
  func.func @transform_5(%arg0: i32) -> (i32, i32) {
    %c0_i32 = arith.constant 0 : i32
    %c0_i32_0 = arith.constant 0 : i32
    %c0_i32_1 = arith.constant 0 : i32
    return %c0_i32, %c0_i32_0 : i32, i32
  }
  func.func @transform_6(%arg0: i32) -> (i32, i32) {
    %c0_i32 = arith.constant 0 : i32
    %c0_i32_0 = arith.constant 0 : i32
    %c0_i32_1 = arith.constant 0 : i32
    return %c0_i32, %c0_i32_0 : i32, i32
  }
  func.func @transform_7(%arg0: i32) -> (i32, i32) {
    %c0_i32 = arith.constant 0 : i32
    %c0_i32_0 = arith.constant 0 : i32
    %c0_i32_1 = arith.constant 0 : i32
    return %c0_i32, %c0_i32_0 : i32, i32
  }
  func.func @transform_8(%arg0: i32) -> (i32, i32) {
    %c0_i32 = arith.constant 0 : i32
    %c0_i32_0 = arith.constant 0 : i32
    return %arg0, %c0_i32 : i32, i32
  }
}

</mosaic_0001>

<bundles_post_ra>
// kernel: tpu_custom_call.1
= control target key start
LH: loop header
LB: loop body
LE: loop exit
PB: predicated region body
PF: predicated region fallthrough
CT: control target
= control target key end

     0   :  { %s2582_s0 = inlined_call_operand.hbm [shape: f32[128,128], index: 0, kind: input, shape index: {}]   ;;  %s2583_s1 = inlined_call_operand.hbm [shape: f32[128,512], index: 1, kind: input, shape index: {}]   ;;  %s2584_s2 = inlined_call_operand.hbm [shape: f32[1,512], index: 2, kind: input, shape index: {}]   ;;  %s2585_s3 = inlined_call_operand.hbm [shape: f32[512,128], index: 3, kind: input, shape index: {}]   ;;  %s2586_s4 = inlined_call_operand.vmem [shape: f32[1,128], index: 4, kind: input, shape index: {}]   ;;  %s2587_s5 = inlined_call_operand.hbm [shape: f32[20,512], index: 5, kind: input, shape index: {}]   ;;  %s2588_s6 = inlined_call_operand.vmem [shape: f32[1,512], index: 6, kind: input, shape index: {}]   ;;  %s2589_s7 = inlined_call_operand.hbm [shape: f32[512,128], index: 7, kind: input, shape index: {}]   ;;  %s2590_s8 = inlined_call_operand.hbm [shape: f32[128,128], index: 8, kind: output, shape index: {}]  }
   0x1   :  { %2593 = sst [smem:[#allocation19_spill]] %s2583_s1 }
   0x2   :  { %2594 = sst [smem:[#allocation20_spill]] %s2584_s2 }
   0x3   :  { %13 = vsyncpa [#allocation3], 0 }
   0x4   :  { %15 = vsyncpa [#allocation3 + $0x1], 0 }
   0x5   :  { %16 = vsyncpa [#allocation6], 0 }
   0x6   :  { %17 = vsyncpa [#allocation9], 0 }
   0x7   :  { %18 = vsyncpa [#allocation12], 0 }
   0x8   :  { %19 = vsyncpa [#allocation4], 0 }
   0x9   :  { %21 = vsyncpa [#allocation4 + $0x1], 0  ;;  %s2138_s27 = smov 0   ;;  %s2140_s28 = smov 0  }
   0xa   :  { %s2142_s29 = smov 0   ;;  %s2144_s30 = smov 0  }
   0xb LB: > { %s2595_s1 = sld [smem:[#allocation19_spill]]  ;;  %s2162_s12 = sadd.s32 4294967295, %s2078_s30   ;;  %s2078_s30 = sphi %s2144_s30, %s2609_s30   ;;  %s2074_s29 = sphi %s2142_s29, %s2608_s29   ;;  %s2070_s28 = sphi %s2140_s28, %s2607_s28   ;;  %s2066_s27 = sphi %s2138_s27, %s2606_s27  }
   0xc   : > { %p1637_p0 = scmp.ge.s32.totalorder %s2078_s30, 1  ;;  %p48_p1 = scmp.eq.s32.totalorder %s2162_s12, 0 }
   0xd   : > { %p231_p2 = scmp.lt.s32.totalorder %s2078_s30, 3  ;;  %s2080_s14 = smov [#allocation5]  }
   0xe   : > { %s244_s15 = sshll.u32 %s2080_s14, 4  ;;  %s268_s18 = sshll.u32 %s2585_s3, 4  ;;  %s245_s15 = int_to_ptr.vmem [resolvable:$true] %s244_s15  ;;  %s269_s18 = int_to_ptr.hbm [resolvable:$true] %s268_s18 }
   0xf   : > { %p2167_p3 = pnand %p1637_p0, %p231_p2  ;;  %s2081_s20 = smov [#allocation8]  }
  0x10   : > { %s270_s21 = sshll.u32 %s2081_s20, 4  ;;  %s2082_s22 = smov 512   ;;  %s271_s21 = int_to_ptr.vmem [resolvable:$true] %s270_s21 }
  0x11   : > { %s242_s11 = sshll.u32 %s2595_s1, 4  ;;  %p1722_p4 = pneg %p2167_p3  ;;  %s243_s11 = int_to_ptr.hbm [resolvable:$true] %s242_s11 }
  0x12   : > { %s2083_s23 = smov 32   ;;  %s2591_s24 = smov 128  }
  0x13   : > { %p2179_p6 = pnand %p1722_p4, %p48_p1  ;;  %s2592_s25 = smov 8  }
  0x14   : > { %s2598_s2 = sld [smem:[#allocation20_spill]]  ;;  %s2086_s14 = smov [#allocation7]  }
  0x15   : > { %1725 = dma.hbm_to_vmem [thread:$0]  (!%p2179_p6), %s243_s11, 8192, %s245_s15, [#allocation6], %s2082_s22, %s2082_s22, %s2083_s23  }
  0x16   : > { %1731 = dma.hbm_to_vmem [thread:$0]  (!%p2179_p6), %s269_s18, 8192, %s271_s21, [#allocation9], %s2591_s24, %s2591_s24, %s2592_s25  }
  0x17   : > { %s259_s16 = sshll.u32 %s2086_s14, 4  ;;  %s285_s17 = sshll.u32 %s2587_s5, 4  ;;  %s260_s16 = int_to_ptr.vmem [resolvable:$true] %s259_s16  ;;  %s286_s17 = int_to_ptr.hbm [resolvable:$true] %s285_s17 }
  0x18   : > { %s2087_s18 = smov [#allocation10]   ;;  %s302_s9 = sshll.u32 %s2589_s7, 4  ;;  %s303_s9 = int_to_ptr.hbm [resolvable:$true] %s302_s9 }
  0x19   : > { %s287_s20 = sshll.u32 %s2087_s18, 4  ;;  %s2210_s11 = sadd.s32 1, %s2078_s30   ;;  %s288_s20 = int_to_ptr.vmem [resolvable:$true] %s287_s20 }
  0x1a   : > { %s257_s10 = sshll.u32 %s2598_s2, 4  ;;  %s34_s15 = sadd.s32 1, %s2074_s29  ;;  %s258_s10 = int_to_ptr.hbm [resolvable:$true] %s257_s10 }
  0x1b   : > { %1728 = dma.hbm_to_vmem [thread:$0]  (!%p2179_p6), %s258_s10, 64, %s260_s16, [#allocation6]  }
  0x1c   : > { %1734 = dma.hbm_to_vmem [thread:$0]  (!%p2179_p6), %s286_s17, 1536, %s288_s20, [#allocation9], %s2082_s22, %s2082_s22, %s2083_s23  }
  0x1d   : > { %s2088_s10 = smov [#allocation11]   ;;  %s1636_s16 = sadd.s32 4294967294, %s2078_s30  }
  0x1e   : > { %s304_s14 = sshll.u32 %s2088_s10, 4  ;;  %s31_s18 = ssub.s32 %s2078_s30, %s2210_s11  ;;  %s305_s14 = int_to_ptr.vmem [resolvable:$true] %s304_s14 }
  0x1f   : > { %1737 = dma.hbm_to_vmem [thread:$0]  (!%p2179_p6), %s303_s9, 8192, %s305_s14, [#allocation12], %s2591_s24, %s2591_s24, %s2592_s25  }
  0x20   : > { %p41_p7 = scmp.ne.s32.totalorder %s2074_s29, %s2070_s28  ;;  %p32_p8 = scmp.eq.s32.totalorder %s31_s18, 0 }
  0x21   : > { %p42_p9 = scmp.eq.s32.totalorder %s2078_s30, 0  ;;  %p47_p10 = scmp.ne.s32.totalorder %s2070_s28, %s2066_s27 }
  0x22   : > { %p218_p11 = scmp.eq.s32.totalorder %s2162_s12, 1  ;;  %p224_p0 = scmp.eq.s32.totalorder %s1636_s16, 1 }
  0x23   : > { %s2222_s22 = scalar_select %p32_p8, %s2074_s29, %s34_s15  }
  0x24   : > { %p2226_p12 = por %p48_p1, %p47_p10  ;;  %p2230_p13 = por %p218_p11, %p41_p7 }
  0x25   : > { %p43_p2 = por %p42_p9, %p41_p7  ;;  %s318_s17 = sand.u32 1, %s2074_s29  }
  0x26   : > { %p2235_p4 = por %p224_p0, %p47_p10  ;;  %p1751_p6 = scmp.lt.s32.totalorder %s2078_s30, 2 }
  0x27   : > { %s1644_s21 = sshll.u32 %s318_s17, 6  ;;  %s1696_s26 = sshll.u32 %s2078_s30, 6 }
  0x28   : > { %s327_s14 = scalar_lea.hbm %s2582_s0, %s1696_s26  ;;  %s322_s18 = scalar_lea.vmem [#allocation2], %s1644_s21 }
  0x29   : > { %s328_s15 = sshll.u32 %s327_s14, 4  ;;  %s330_s24 = sshll.u32 %s322_s18, 4  ;;  %s329_s15 = int_to_ptr.hbm [resolvable:$true] %s328_s15  ;;  %s331_s24 = int_to_ptr.vmem [resolvable:$true] %s330_s24 }
  0x2a   : > { %p2244_p8 = pnand %p1751_p6, %p43_p2  ;;  %s319_s25 = scalar_lea.sflag [#allocation3], %s318_s17 }
  0x2b   : > { %s1970_s1 = sshra.s32 %s329_s15, 4  ;;  %s1977_s21 = scalar_lea.hbm %s2582_s0, 128  ;;  %s1971_s1 = int_to_ptr.hbm [resolvable:$true] %s1970_s1 }
  0x2c   : > { %s1972_s2 = scalar_lea.hbm %s1971_s1, 64  ;;  %p1974_p9 = pneg %p2244_p8 }
  0x2d   : > { %p1973_p7 = scmp.ne.s32.totalorder %s1971_s1, %s1972_s2  ;;  %p1978_p0 = scmp.lt.s32.totalorder %s1971_s1, %s2582_s0 }
  0x2e   : > { %p1979_p2 = scmp.lt.s32.totalorder %s1977_s21, %s1972_s2 }
  0x2f   : > { %p1975_p10 = pnand %p1974_p9, %p1973_p7 }
  0x30   : > { %p1980_p6 = por %p1979_p2, %p1978_p0 }
  0x31   : > { %p1976_p11 = pneg %p1975_p10 }
  0x33   : > { %p1981_p5 = pnand %p1980_p6, %p1976_p11 }
  0x35   : > { %1984 = shalt.err (!%p1981_p5)
}
  0x36   : > { %s2603_s17 = smov 8   ;;  %s2604_s18 = smov 128  }
  0x37   : > { %1741 = dma.hbm_to_vmem [thread:$0]  (!%p2244_p8), %s329_s15, 1024, %s331_s24, %s319_s25, %s2604_s18, %s2604_s18, %s2603_s17  }
  0x38   : > { %342 = sbr.rel (%p2167_p3) target bundleno = 1021 (0x3fd), region = 52  ;;  %s2264_s26 = sand.u32 (!%p2167_p3), 1, %s2070_s28  }
  0x39   : > { %s1648_s1 = sshll.u32 (!%p2167_p3), %s2264_s26, 6  ;;  %s345_s2 = scalar_lea.sflag (!%p2167_p3), [#allocation3], %s2264_s26 }
  0x3a   : > { %s2270_s9 = scalar_lea.vmem (!%p2167_p3), [#allocation2], %s1648_s1 }
  0x3d   : > { %2045 = dma.done.wait (%p2226_p12), %s345_s2, 1024  }
  0x3e   : > { %2047 = vsyncadd (%p2226_p12), %s345_s2, 4294966272 }
  0x3f   : > { %2049 = dma.done.wait (%p48_p1), [#allocation6], 8256  }
  0x40   : > { %2051 = vsyncadd (%p48_p1), [#allocation6], 4294959040 }
  0x41   : > { %2053 = dma.done.wait (%p48_p1), [#allocation9], 9728  }
  0x42   : > { %2055 = vsyncadd (%p48_p1), [#allocation9], 4294957568 }
  0x43   : > { %2057 = dma.done.wait (%p48_p1), [#allocation12], 8192  }
  0x44   : > { %2059 = vsyncadd (%p48_p1), [#allocation12], 4294959104  ;;  %v479_v0 = vld [vmem:[#allocation5 + $0x1f0] sm:$0xff]  ;;  %v480_v2 = vld [vmem:[#allocation5 + $0x1f8] sm:$0xff]  ;;  %s2089_s25 = smov 108   ;;  %s2090_s19 = smov 112  }
  0x45   : > { %v475_v1 = vld [vmem:[#allocation5 + $0x1d0] sm:$0xff]  ;;  %573 = vmatpush.msra.mxu2 %v479_v0  ;;  %614 = vmatpush.msra.mxu3 %v480_v2  ;;  %v476_v3 = vld [vmem:[#allocation5 + $0x1d8] sm:$0xff]  ;;  %v477_v6 = vld [vmem:[#allocation5 + $0x1e0] sm:$0xff]  ;;  %vm1054_vm0 = vcmask 1043456   ;;  %vm1037_vm1 = vcmask 162816   ;;  %s2532_s21 = scalar_lea.vmem [#allocation13], %s1648_s1 }
  0x46   : > { %v471_v4 = vld [vmem:[#allocation5 + $0x1b0] sm:$0xff]  ;;  %v472_v5 = vld [vmem:[#allocation5 + $0x1b8] sm:$0xff]  ;;  %v473_v7 = vld [vmem:[#allocation5 + $0x1c0] sm:$0xff]  ;;  %491 = vmatpush.msra.mxu0 %v477_v6  ;;  %s1697_s10 = sshll.u32 %s2162_s12, 6  ;;  %s1512_s1 = sshll.u32 %s2532_s21, 4  ;;  %s1513_s1 = int_to_ptr.vmem [resolvable:$true] %s1512_s1 }
  0x47   : > { %574 = vmatpush.msra.mxu2 %v475_v1  ;;  %615 = vmatpush.msra.mxu3 %v476_v3  ;;  %v478_v8 = vld [vmem:[#allocation5 + $0x1e8] sm:$0xff]  ;;  %v467_v9 = vld [vmem:[#allocation5 + $0x190] sm:$0xff]  ;;  %v468_v10 = vld [vmem:[#allocation5 + $0x198] sm:$0xff]  ;;  %s1511_s18 = scalar_lea.hbm %s2590_s8, %s1697_s10 }
  0x48   : > { %532 = vmatpush.msra.mxu1 %v478_v8  ;;  %v469_v11 = vld [vmem:[#allocation5 + $0x1a0] sm:$0xff]  ;;  %v474_v12 = vld [vmem:[#allocation5 + $0x1c8] sm:$0xff]  ;;  %v463_v13 = vld [vmem:[#allocation5 + $0x170] sm:$0xff]  ;;  %492 = vmatpush.msra.mxu0 %v473_v7  ;;  %s1514_s2 = sshll.u32 %s1511_s18, 4  ;;  %s1515_s2 = int_to_ptr.hbm [resolvable:$true] %s1514_s2 }
  0x49   : > { %575 = vmatpush.msra.mxu2 %v471_v4  ;;  %616 = vmatpush.msra.mxu3 %v472_v5  ;;  %v464_v14 = vld [vmem:[#allocation5 + $0x178] sm:$0xff]  ;;  %v470_v15 = vld [vmem:[#allocation5 + $0x1a8] sm:$0xff]  ;;  %v465_v16 = vld [vmem:[#allocation5 + $0x180] sm:$0xff]  ;;  %s2014_s12 = sshra.s32 %s1515_s2, 4  ;;  %s2015_s12 = int_to_ptr.hbm [resolvable:$true] %s2014_s12 }
  0x4a   : > { %533 = vmatpush.msra.mxu1 %v474_v12  ;;  %v466_v17 = vld [vmem:[#allocation5 + $0x188] sm:$0xff]  ;;  %v459_v18 = vld [vmem:[#allocation5 + $0x150] sm:$0xff]  ;;  %493 = vmatpush.msra.mxu0 %v469_v11  ;;  %v460_v19 = vld [vmem:[#allocation5 + $0x158] sm:$0xff]  ;;  %s2016_s13 = scalar_lea.hbm %s2015_s12, 64  ;;  %p2021_p12 = scmp.lt.s32.totalorder %s2015_s12, %s2590_s8 }
  0x4b   : > { %576 = vmatpush.msra.mxu2 %v467_v9  ;;  %617 = vmatpush.msra.mxu3 %v468_v10  ;;  %v461_v20 = vld [vmem:[#allocation5 + $0x160] sm:$0xff]  ;;  %v462_v21 = vld [vmem:[#allocation5 + $0x168] sm:$0xff]  ;;  %v455_v22 = vld [vmem:[#allocation5 + $0x130] sm:$0xff]  ;;  %p2017_p1 = scmp.ne.s32.totalorder %s2015_s12, %s2016_s13 }
  0x4c   : > { %534 = vmatpush.msra.mxu1 %v470_v15  ;;  %494 = vmatpush.msra.mxu0 %v465_v16  ;;  %v456_v23 = vld [vmem:[#allocation5 + $0x138] sm:$0xff]  ;;  %v457_v24 = vld [vmem:[#allocation5 + $0x140] sm:$0xff]  ;;  %v458_v25 = vld [vmem:[#allocation5 + $0x148] sm:$0xff] }
  0x4d   : > { %577 = vmatpush.msra.mxu2 %v463_v13  ;;  %618 = vmatpush.msra.mxu3 %v464_v14  ;;  %v451_v26 = vld [vmem:[#allocation5 + $0x110] sm:$0xff]  ;;  %v452_v27 = vld [vmem:[#allocation5 + $0x118] sm:$0xff]  ;;  %v453_v28 = vld [vmem:[#allocation5 + $0x120] sm:$0xff]  ;;  %p2018_p3 = pnand %p2017_p1, %p2230_p13 }
  0x4e   : > { %535 = vmatpush.msra.mxu1 %v466_v17  ;;  %495 = vmatpush.msra.mxu0 %v461_v20  ;;  %v454_v29 = vld [vmem:[#allocation5 + $0x128] sm:$0xff]  ;;  %v447_v30 = vld [vmem:[#allocation5 + $0xf0] sm:$0xff]  ;;  %v448_v31 = vld [vmem:[#allocation5 + $0xf8] sm:$0xff] }
  0x4f   : > { %578 = vmatpush.msra.mxu2 %v459_v18  ;;  %619 = vmatpush.msra.mxu3 %v460_v19  ;;  %v449_v32 = vld [vmem:[#allocation5 + $0x100] sm:$0xff]  ;;  %v450_v33 = vld [vmem:[#allocation5 + $0x108] sm:$0xff]  ;;  %v443_v34 = vld [vmem:[#allocation5 + $0xd0] sm:$0xff]  ;;  %p2019_p5 = pneg %p2018_p3 }
  0x50   : > { %536 = vmatpush.msra.mxu1 %v462_v21  ;;  %496 = vmatpush.msra.mxu0 %v457_v24  ;;  %v444_v35 = vld [vmem:[#allocation5 + $0xd8] sm:$0xff]  ;;  %v445_v36 = vld [vmem:[#allocation5 + $0xe0] sm:$0xff]  ;;  %v446_v37 = vld [vmem:[#allocation5 + $0xe8] sm:$0xff] }
  0x51   : > { %579 = vmatpush.msra.mxu2 %v455_v22  ;;  %620 = vmatpush.msra.mxu3 %v456_v23  ;;  %v439_v38 = vld [vmem:[#allocation5 + $0xb0] sm:$0xff]  ;;  %v440_v39 = vld [vmem:[#allocation5 + $0xb8] sm:$0xff]  ;;  %v441_v40 = vld [vmem:[#allocation5 + $0xc0] sm:$0xff] }
  0x52   : > { %537 = vmatpush.msra.mxu1 %v458_v25  ;;  %497 = vmatpush.msra.mxu0 %v453_v28  ;;  %v442_v41 = vld [vmem:[#allocation5 + $0xc8] sm:$0xff]  ;;  %v435_v42 = vld [vmem:[#allocation5 + $0x90] sm:$0xff]  ;;  %v436_v43 = vld [vmem:[#allocation5 + $0x98] sm:$0xff] }
  0x53   : > { %580 = vmatpush.msra.mxu2 %v451_v26  ;;  %621 = vmatpush.msra.mxu3 %v452_v27  ;;  %v437_v44 = vld [vmem:[#allocation5 + $0xa0] sm:$0xff]  ;;  %v438_v45 = vld [vmem:[#allocation5 + $0xa8] sm:$0xff]  ;;  %v431_v46 = vld [vmem:[#allocation5 + $0x70] sm:$0xff] }
  0x54   : > { %538 = vmatpush.msra.mxu1 %v454_v29  ;;  %498 = vmatpush.msra.mxu0 %v449_v32  ;;  %v432_v47 = vld [vmem:[#allocation5 + $0x78] sm:$0xff]  ;;  %v433_v48 = vld [vmem:[#allocation5 + $0x80] sm:$0xff]  ;;  %v434_v49 = vld [vmem:[#allocation5 + $0x88] sm:$0xff] }
  0x55   : > { %581 = vmatpush.msra.mxu2 %v447_v30  ;;  %622 = vmatpush.msra.mxu3 %v448_v31  ;;  %v427_v50 = vld [vmem:[#allocation5 + $0x50] sm:$0xff]  ;;  %v428_v51 = vld [vmem:[#allocation5 + $0x58] sm:$0xff]  ;;  %v429_v52 = vld [vmem:[#allocation5 + $0x60] sm:$0xff] }
  0x56   : > { %539 = vmatpush.msra.mxu1 %v450_v33  ;;  %499 = vmatpush.msra.mxu0 %v445_v36  ;;  %v430_v53 = vld [vmem:[#allocation5 + $0x68] sm:$0xff]  ;;  %v423_v54 = vld [vmem:[#allocation5 + $0x30] sm:$0xff]  ;;  %v424_v55 = vld [vmem:[#allocation5 + $0x38] sm:$0xff] }
  0x57   : > { %582 = vmatpush.msra.mxu2 %v443_v34  ;;  %623 = vmatpush.msra.mxu3 %v444_v35  ;;  %v425_v56 = vld [vmem:[#allocation5 + $0x40] sm:$0xff]  ;;  %v426_v57 = vld [vmem:[#allocation5 + $0x48] sm:$0xff]  ;;  %v419_v58 = vld [vmem:[#allocation5 + $0x10] sm:$0xff] }
  0x58   : > { %540 = vmatpush.msra.mxu1 %v446_v37  ;;  %500 = vmatpush.msra.mxu0 %v441_v40  ;;  %v420_v59 = vld [vmem:[#allocation5 + $0x18] sm:$0xff]  ;;  %v2289_v60 = vld [vmem:[%s2270_s9] sm:$0xff]  ;;  %v422_v62 = vld [vmem:[#allocation5 + $0x28] sm:$0xff] }
  0x59   : > { %583 = vmatpush.msra.mxu2 %v439_v38  ;;  %624 = vmatpush.msra.mxu3 %v440_v39  ;;  %v421_v61 = vld [vmem:[#allocation5 + $0x20] sm:$0xff]  ;;  %v418_v0 = vld [vmem:[#allocation5 + $0x8] sm:$0xff]  ;;  %v2303_v2 = vld [vmem:[%s2270_s9 + $0x10] sm:$0xff] }
  0x5a   : > { %541 = vmatpush.msra.mxu1 %v442_v41  ;;  %501 = vmatpush.msra.mxu0 %v437_v44  ;;  %v417_v63 = vld [vmem:[#allocation5] sm:$0xff]  ;;  %v2296_v1 = vld [vmem:[%s2270_s9 + $0x8] sm:$0xff]  ;;  %v2308_v3 = vld [vmem:[%s2270_s9 + $0x18] sm:$0xff] }
  0x5b   : > { %584 = vmatpush.msra.mxu2 %v435_v42  ;;  %625 = vmatpush.msra.mxu3 %v436_v43  ;;  %v734_v4 = vld [vmem:[#allocation8 + $0x178] sm:$0xff]  ;;  %v733_v8 = vld [vmem:[#allocation8 + $0x170] sm:$0xff]  ;;  %v732_v12 = vld [vmem:[#allocation8 + $0x168] sm:$0xff] }
  0x5c   : > { %542 = vmatpush.msra.mxu1 %v438_v45  ;;  %502 = vmatpush.msra.mxu0 %v433_v48  ;;  %v702_v5 = vld [vmem:[#allocation8 + $0x78] sm:$0xff]  ;;  %v701_v9 = vld [vmem:[#allocation8 + $0x70] sm:$0xff]  ;;  %v700_v13 = vld [vmem:[#allocation8 + $0x68] sm:$0xff] }
  0x5d   : > { %585 = vmatpush.msra.mxu2 %v431_v46  ;;  %626 = vmatpush.msra.mxu3 %v432_v47  ;;  %v750_v6 = vld [vmem:[#allocation8 + $0x1f8] sm:$0xff]  ;;  %v749_v10 = vld [vmem:[#allocation8 + $0x1f0] sm:$0xff]  ;;  %v748_v14 = vld [vmem:[#allocation8 + $0x1e8] sm:$0xff] }
  0x5e   : > { %543 = vmatpush.msra.mxu1 %v434_v49  ;;  %503 = vmatpush.msra.mxu0 %v429_v52  ;;  %v718_v7 = vld [vmem:[#allocation8 + $0xf8] sm:$0xff]  ;;  %v717_v11 = vld [vmem:[#allocation8 + $0xf0] sm:$0xff]  ;;  %v716_v15 = vld [vmem:[#allocation8 + $0xe8] sm:$0xff] }
  0x5f   : > { %586 = vmatpush.msra.mxu2 %v427_v50  ;;  %627 = vmatpush.msra.mxu3 %v428_v51  ;;  %v731_v16 = vld [vmem:[#allocation8 + $0x160] sm:$0xff]  ;;  %v730_v20 = vld [vmem:[#allocation8 + $0x158] sm:$0xff]  ;;  %v729_v25 = vld [vmem:[#allocation8 + $0x150] sm:$0xff] }
  0x60   : > { %544 = vmatpush.msra.mxu1 %v430_v53  ;;  %504 = vmatpush.msra.mxu0 %v425_v56  ;;  %v699_v17 = vld [vmem:[#allocation8 + $0x60] sm:$0xff]  ;;  %v698_v21 = vld [vmem:[#allocation8 + $0x58] sm:$0xff]  ;;  %v697_v26 = vld [vmem:[#allocation8 + $0x50] sm:$0xff] }
  0x61   : > { %587 = vmatpush.msra.mxu2 %v423_v54  ;;  %628 = vmatpush.msra.mxu3 %v424_v55  ;;  %v747_v18 = vld [vmem:[#allocation8 + $0x1e0] sm:$0xff]  ;;  %v746_v23 = vld [vmem:[#allocation8 + $0x1d8] sm:$0xff]  ;;  %v745_v27 = vld [vmem:[#allocation8 + $0x1d0] sm:$0xff] }
  0x62   : > { %545 = vmatpush.msra.mxu1 %v426_v57  ;;  %505 = vmatpush.msra.mxu0 %v421_v61  ;;  %v715_v19 = vld [vmem:[#allocation8 + $0xe0] sm:$0xff]  ;;  %v714_v24 = vld [vmem:[#allocation8 + $0xd8] sm:$0xff]  ;;  %v713_v28 = vld [vmem:[#allocation8 + $0xd0] sm:$0xff] }
  0x63   : > { %588 = vmatpush.msra.mxu2 %v419_v58  ;;  %629 = vmatpush.msra.mxu3 %v420_v59  ;;  %v2317_v22 = vld [vmem:[%s2270_s9 + $0x20] sm:$0xff]  ;;  %v728_v29 = vld [vmem:[#allocation8 + $0x148] sm:$0xff]  ;;  %v725_v42 = vld [vmem:[#allocation8 + $0x130] sm:$0xff] }
  0x64   : > { %589 = vmatmul.f32.vlgmr.msra.gmra.mxu2 %v2289_v60  ;;  %630 = vmatmul.f32.vlgmr.msra.gmra.mxu3 %v2289_v60  ;;  %v696_v30 = vld [vmem:[#allocation8 + $0x48] sm:$0xff]  ;;  %v727_v33 = vld [vmem:[#allocation8 + $0x140] sm:$0xff]  ;;  %v726_v38 = vld [vmem:[#allocation8 + $0x138] sm:$0xff] }
  0x65   : > { %546 = vmatpush.msra.mxu1 %v422_v62  ;;  %506 = vmatpush.msra.mxu0 %v417_v63  ;;  %v744_v31 = vld [vmem:[#allocation8 + $0x1c8] sm:$0xff]  ;;  %v695_v34 = vld [vmem:[#allocation8 + $0x40] sm:$0xff]  ;;  %v694_v39 = vld [vmem:[#allocation8 + $0x38] sm:$0xff] }
  0x66   : > { %507 = vmatmul.f32.vlgmr.msra.gmra.mxu0 %v2289_v60  ;;  %837 = vmatpush.msrb.mxu2 %v734_v4  ;;  %v712_v32 = vld [vmem:[#allocation8 + $0xc8] sm:$0xff]  ;;  %v743_v36 = vld [vmem:[#allocation8 + $0x1c0] sm:$0xff]  ;;  %v742_v40 = vld [vmem:[#allocation8 + $0x1b8] sm:$0xff] }
  0x67   : > { %547 = vmatpush.msra.mxu1 %v418_v0  ;;  %755 = vmatpush.msrb.mxu0 %v702_v5  ;;  %v2324_v35 = vld [vmem:[%s2270_s9 + $0x28] sm:$0xff]  ;;  %v710_v41 = vld [vmem:[#allocation8 + $0xb8] sm:$0xff]  ;;  %v693_v43 = vld [vmem:[#allocation8 + $0x30] sm:$0xff] }
  0x68   : > { %548 = vmatmul.f32.vlgmr.msra.gmra.mxu1 %v2289_v60  ;;  %878 = vmatpush.msrb.mxu3 %v750_v6  ;;  %v711_v37 = vld [vmem:[#allocation8 + $0xc0] sm:$0xff]  ;;  %v741_v44 = vld [vmem:[#allocation8 + $0x1b0] sm:$0xff]  ;;  %v724_v46 = vld [vmem:[#allocation8 + $0x128] sm:$0xff] }
  0x69   : > { %796 = vmatpush.msrb.mxu1 %v718_v7  ;;  %838 = vmatpush.msrb.mxu2 %v733_v8  ;;  %v709_v45 = vld [vmem:[#allocation8 + $0xb0] sm:$0xff]  ;;  %v692_v47 = vld [vmem:[#allocation8 + $0x28] sm:$0xff]  ;;  %v723_v51 = vld [vmem:[#allocation8 + $0x120] sm:$0xff] }
  0x6a   : > { %756 = vmatpush.msrb.mxu0 %v701_v9  ;;  %879 = vmatpush.msrb.mxu3 %v749_v10  ;;  %v2331_v48 = vld [vmem:[%s2270_s9 + $0x30] sm:$0xff]  ;;  %v691_v52 = vld [vmem:[#allocation8 + $0x20] sm:$0xff]  ;;  %v722_v55 = vld [vmem:[#allocation8 + $0x118] sm:$0xff] }
  0x6b   : > { %797 = vmatpush.msrb.mxu1 %v717_v11  ;;  %839 = vmatpush.msrb.mxu2 %v732_v12  ;;  %v740_v49 = vld [vmem:[#allocation8 + $0x1a8] sm:$0xff]  ;;  %v739_v53 = vld [vmem:[#allocation8 + $0x1a0] sm:$0xff]  ;;  %v690_v56 = vld [vmem:[#allocation8 + $0x18] sm:$0xff] }
  0x6c   : > { %592 = vmatmul.f32.gmra.mxu2 %v2296_v1  ;;  %633 = vmatmul.f32.gmra.mxu3 %v2296_v1  ;;  %v708_v50 = vld [vmem:[#allocation8 + $0xa8] sm:$0xff]  ;;  %v707_v54 = vld [vmem:[#allocation8 + $0xa0] sm:$0xff]  ;;  %v738_v57 = vld [vmem:[#allocation8 + $0x198] sm:$0xff] }
  0x6d   : > { %757 = vmatpush.msrb.mxu0 %v700_v13  ;;  %880 = vmatpush.msrb.mxu3 %v748_v14  ;;  %v706_v58 = vld [vmem:[#allocation8 + $0x98] sm:$0xff]  ;;  %v721_v59 = vld [vmem:[#allocation8 + $0x110] sm:$0xff]  ;;  %v720_v4 = vld [vmem:[#allocation8 + $0x108] sm:$0xff] }
  0x6e   : > { %510 = vmatmul.f32.gmra.mxu0 %v2296_v1  ;;  %798 = vmatpush.msrb.mxu1 %v716_v15  ;;  %v689_v61 = vld [vmem:[#allocation8 + $0x10] sm:$0xff]  ;;  %v688_v5 = vld [vmem:[#allocation8 + $0x8] sm:$0xff]  ;;  %v719_v8 = vld [vmem:[#allocation8 + $0x100] sm:$0xff] }
  0x6f   : > { %840 = vmatpush.msrb.mxu2 %v731_v16  ;;  %758 = vmatpush.msrb.mxu0 %v699_v17  ;;  %v2338_v62 = vld [vmem:[%s2270_s9 + $0x38] sm:$0xff]  ;;  %v736_v6 = vld [vmem:[#allocation8 + $0x188] sm:$0xff]  ;;  %v687_v9 = vld [vmem:[#allocation8] sm:$0xff]  ;;  %s1500_s9 = scalar_lea.sflag [#allocation4], %s2264_s26 }
  0x70   : > { %551 = vmatmul.f32.gmra.mxu1 %v2296_v1  ;;  %881 = vmatpush.msrb.mxu3 %v747_v18  ;;  %v737_v63 = vld [vmem:[#allocation8 + $0x190] sm:$0xff]  ;;  %v704_v7 = vld [vmem:[#allocation8 + $0x88] sm:$0xff]  ;;  %v735_v10 = vld [vmem:[#allocation8 + $0x180] sm:$0xff] }
  0x71   : > { %799 = vmatpush.msrb.mxu1 %v715_v19  ;;  %841 = vmatpush.msrb.mxu2 %v730_v20  ;;  %v705_v0 = vld [vmem:[#allocation8 + $0x90] sm:$0xff]  ;;  %v703_v11 = vld [vmem:[#allocation8 + $0x80] sm:$0xff]  ;;  %v481_v12 = vld [vmem:[#allocation7] sm:$0xf] }
  0x72   : > { %759 = vmatpush.msrb.mxu0 %v698_v21  ;;  %882 = vmatpush.msrb.mxu3 %v746_v23  ;;  %v2344_v13 = vperm.slane %v481_v12, 0  ;;  %v2346_v14 = vperm.slane %v481_v12, 1  ;;  %v2348_v15 = vperm.slane %v481_v12, 2  ;;  %v2350_v16 = vperm.slane %v481_v12, 3 }
  0x73   : > { %800 = vmatpush.msrb.mxu1 %v714_v24  ;;  %842 = vmatpush.msrb.mxu2 %v729_v25 }
  0x74   : > { %595 = vmatmul.f32.gmra.mxu2 %v2303_v2  ;;  %636 = vmatmul.f32.gmra.mxu3 %v2303_v2 }
  0x75   : > { %760 = vmatpush.msrb.mxu0 %v697_v26  ;;  %883 = vmatpush.msrb.mxu3 %v745_v27 }
  0x76   : > { %513 = vmatmul.f32.gmra.mxu0 %v2303_v2  ;;  %801 = vmatpush.msrb.mxu1 %v713_v28 }
  0x77   : > { %843 = vmatpush.msrb.mxu2 %v728_v29  ;;  %761 = vmatpush.msrb.mxu0 %v696_v30 }
  0x78   : > { %554 = vmatmul.f32.gmra.mxu1 %v2303_v2  ;;  %884 = vmatpush.msrb.mxu3 %v744_v31 }
  0x79   : > { %802 = vmatpush.msrb.mxu1 %v712_v32  ;;  %844 = vmatpush.msrb.mxu2 %v727_v33 }
  0x7a   : > { %762 = vmatpush.msrb.mxu0 %v695_v34  ;;  %885 = vmatpush.msrb.mxu3 %v743_v36 }
  0x7b   : > { %803 = vmatpush.msrb.mxu1 %v711_v37  ;;  %845 = vmatpush.msrb.mxu2 %v726_v38 }
  0x7c   : > { %598 = vmatmul.f32.gmra.mxu2 %v2308_v3  ;;  %639 = vmatmul.f32.gmra.mxu3 %v2308_v3 }
  0x7d   : > { %763 = vmatpush.msrb.mxu0 %v694_v39  ;;  %886 = vmatpush.msrb.mxu3 %v742_v40 }
  0x7e   : > { %516 = vmatmul.f32.gmra.mxu0 %v2308_v3  ;;  %804 = vmatpush.msrb.mxu1 %v710_v41 }
  0x7f   : > { %846 = vmatpush.msrb.mxu2 %v725_v42  ;;  %764 = vmatpush.msrb.mxu0 %v693_v43 }
  0x80   : > { %557 = vmatmul.f32.gmra.mxu1 %v2308_v3  ;;  %887 = vmatpush.msrb.mxu3 %v741_v44 }
  0x81   : > { %805 = vmatpush.msrb.mxu1 %v709_v45  ;;  %847 = vmatpush.msrb.mxu2 %v724_v46 }
  0x82   : > { %765 = vmatpush.msrb.mxu0 %v692_v47  ;;  %888 = vmatpush.msrb.mxu3 %v740_v49 }
  0x83   : > { %806 = vmatpush.msrb.mxu1 %v708_v50  ;;  %848 = vmatpush.msrb.mxu2 %v723_v51 }
  0x84   : > { %601 = vmatmul.f32.gmra.mxu2 %v2317_v22  ;;  %642 = vmatmul.f32.gmra.mxu3 %v2317_v22 }
  0x85   : > { %766 = vmatpush.msrb.mxu0 %v691_v52  ;;  %889 = vmatpush.msrb.mxu3 %v739_v53 }
  0x86   : > { %519 = vmatmul.f32.gmra.mxu0 %v2317_v22  ;;  %807 = vmatpush.msrb.mxu1 %v707_v54 }
  0x87   : > { %849 = vmatpush.msrb.mxu2 %v722_v55  ;;  %767 = vmatpush.msrb.mxu0 %v690_v56 }
  0x88   : > { %560 = vmatmul.f32.gmra.mxu1 %v2317_v22  ;;  %890 = vmatpush.msrb.mxu3 %v738_v57 }
  0x89   : > { %808 = vmatpush.msrb.mxu1 %v706_v58  ;;  %850 = vmatpush.msrb.mxu2 %v721_v59 }
  0x8a   : > { %768 = vmatpush.msrb.mxu0 %v689_v61  ;;  %891 = vmatpush.msrb.mxu3 %v737_v63 }
  0x8b   : > { %809 = vmatpush.msrb.mxu1 %v705_v0  ;;  %851 = vmatpush.msrb.mxu2 %v720_v4 }
  0x8c   : > { %604 = vmatmul.f32.gmra.mxu2 %v2324_v35  ;;  %645 = vmatmul.f32.gmra.mxu3 %v2324_v35 }
  0x8d   : > { %769 = vmatpush.msrb.mxu0 %v688_v5  ;;  %892 = vmatpush.msrb.mxu3 %v736_v6 }
  0x8e   : > { %522 = vmatmul.f32.gmra.mxu0 %v2324_v35  ;;  %810 = vmatpush.msrb.mxu1 %v704_v7 }
  0x8f   : > { %852 = vmatpush.msrb.mxu2 %v719_v8  ;;  %770 = vmatpush.msrb.mxu0 %v687_v9 }
  0x90   : > { %563 = vmatmul.f32.gmra.mxu1 %v2324_v35  ;;  %893 = vmatpush.msrb.mxu3 %v735_v10 }
  0x91   : > { %811 = vmatpush.msrb.mxu1 %v703_v11 }
  0x94   : > { %607 = vmatmul.f32.gmra.mxu2 %v2331_v48  ;;  %648 = vmatmul.f32.gmra.mxu3 %v2331_v48 }
  0x96   : > { %525 = vmatmul.f32.gmra.mxu0 %v2331_v48 }
  0x98   : > { %566 = vmatmul.f32.gmra.mxu1 %v2331_v48 }
  0x9c   : > { %610 = vmatmul.f32.gmra.mxu2 %v2338_v62  ;;  %651 = vmatmul.f32.gmra.mxu3 %v2338_v62 }
  0x9e   : > { %528 = vmatmul.f32.gmra.mxu0 %v2338_v62 }
  0xa0   : > { %569 = vmatmul.f32.gmra.mxu1 %v2338_v62 }
  0xe3   : > { %v508_v17 = vpop.f32.mrf.mxu0 }
  0xe4   : > { %v509_v19 = vadd.f32 %v508_v17, %v2344_v13 }
  0xe5   : > { %v549_v18 = vpop.f32.mrf.mxu1 }
  0xe6   : > { %v550_v20 = vadd.f32 %v549_v18, %v2346_v14  ;;  %v655_v25 = vmax.f32 %v509_v19, 0.0 }
  0xe7   : > { %v590_v21 = vpop.f32.mrf.mxu2  ;;  %v631_v23 = vpop.f32.mrf.mxu3 }
  0xe8   : > { %v591_v24 = vadd.f32 %v590_v21, %v2348_v15  ;;  %v632_v26 = vadd.f32 %v631_v23, %v2350_v16  ;;  %v656_v27 = vmax.f32 %v550_v20, 0.0  ;;  %771 = vmatmul.f32.vlgmr.msrb.gmra.mxu0 %v655_v25 }
  0xea   : > { %v657_v28 = vmax.f32 %v591_v24, 0.0  ;;  %v658_v29 = vmax.f32 %v632_v26, 0.0  ;;  %812 = vmatmul.f32.vlgmr.msrb.gmra.mxu1 %v656_v27 }
  0xeb   : > { %v511_v30 = vpop.f32.mrf.mxu0 }
  0xec   : > { %853 = vmatmul.f32.vlgmr.msrb.gmra.mxu2 %v657_v28  ;;  %894 = vmatmul.f32.vlgmr.msrb.gmra.mxu3 %v658_v29  ;;  %v512_v32 = vadd.f32 %v511_v30, %v2344_v13 }
  0xed   : > { %v552_v31 = vpop.f32.mrf.mxu1 }
  0xee   : > { %v553_v33 = vadd.f32 %v552_v31, %v2346_v14  ;;  %v659_v39 = vmax.f32 %v512_v32, 0.0 }
  0xef   : > { %v593_v34 = vpop.f32.mrf.mxu2  ;;  %v634_v36 = vpop.f32.mrf.mxu3 }
  0xf0   : > { %v594_v37 = vadd.f32 %v593_v34, %v2348_v15  ;;  %v635_v38 = vadd.f32 %v634_v36, %v2350_v16  ;;  %v660_v40 = vmax.f32 %v553_v33, 0.0  ;;  %774 = vmatmul.f32.gmra.mxu0 %v659_v39 }
  0xf2   : > { %v661_v41 = vmax.f32 %v594_v37, 0.0  ;;  %v662_v42 = vmax.f32 %v635_v38, 0.0  ;;  %815 = vmatmul.f32.gmra.mxu1 %v660_v40 }
  0xf3   : > { %v514_v43 = vpop.f32.mrf.mxu0 }
  0xf4   : > { %856 = vmatmul.f32.gmra.mxu2 %v661_v41  ;;  %897 = vmatmul.f32.gmra.mxu3 %v662_v42  ;;  %v515_v45 = vadd.f32 %v514_v43, %v2344_v13 }
  0xf5   : > { %v555_v44 = vpop.f32.mrf.mxu1 }
  0xf6   : > { %v556_v46 = vadd.f32 %v555_v44, %v2346_v14  ;;  %v663_v52 = vmax.f32 %v515_v45, 0.0 }
  0xf7   : > { %v596_v47 = vpop.f32.mrf.mxu2  ;;  %v637_v49 = vpop.f32.mrf.mxu3 }
  0xf8   : > { %v597_v50 = vadd.f32 %v596_v47, %v2348_v15  ;;  %v638_v51 = vadd.f32 %v637_v49, %v2350_v16  ;;  %v664_v53 = vmax.f32 %v556_v46, 0.0  ;;  %777 = vmatmul.f32.gmra.mxu0 %v663_v52 }
  0xfa   : > { %v665_v54 = vmax.f32 %v597_v50, 0.0  ;;  %v666_v55 = vmax.f32 %v638_v51, 0.0  ;;  %818 = vmatmul.f32.gmra.mxu1 %v664_v53 }
  0xfb   : > { %v517_v56 = vpop.f32.mrf.mxu0 }
  0xfc   : > { %859 = vmatmul.f32.gmra.mxu2 %v665_v54  ;;  %900 = vmatmul.f32.gmra.mxu3 %v666_v55  ;;  %v518_v58 = vadd.f32 %v517_v56, %v2344_v13 }
  0xfd   : > { %v558_v57 = vpop.f32.mrf.mxu1 }
  0xfe   : > { %v559_v59 = vadd.f32 %v558_v57, %v2346_v14  ;;  %v667_v5 = vmax.f32 %v518_v58, 0.0 }
  0xff   : > { %v599_v61 = vpop.f32.mrf.mxu2  ;;  %v640_v63 = vpop.f32.mrf.mxu3 }
 0x100   : > { %v600_v0 = vadd.f32 %v599_v61, %v2348_v15  ;;  %v641_v4 = vadd.f32 %v640_v63, %v2350_v16  ;;  %v668_v6 = vmax.f32 %v559_v59, 0.0  ;;  %780 = vmatmul.f32.gmra.mxu0 %v667_v5 }
 0x102   : > { %v669_v7 = vmax.f32 %v600_v0, 0.0  ;;  %v670_v8 = vmax.f32 %v641_v4, 0.0  ;;  %821 = vmatmul.f32.gmra.mxu1 %v668_v6 }
 0x103   : > { %v520_v9 = vpop.f32.mrf.mxu0 }
 0x104   : > { %862 = vmatmul.f32.gmra.mxu2 %v669_v7  ;;  %903 = vmatmul.f32.gmra.mxu3 %v670_v8  ;;  %v521_v11 = vadd.f32 %v520_v9, %v2344_v13 }
 0x105   : > { %v561_v10 = vpop.f32.mrf.mxu1 }
 0x106   : > { %v562_v12 = vadd.f32 %v561_v10, %v2346_v14  ;;  %v671_v21 = vmax.f32 %v521_v11, 0.0 }
 0x107   : > { %v602_v17 = vpop.f32.mrf.mxu2  ;;  %v643_v18 = vpop.f32.mrf.mxu3 }
 0x108   : > { %v603_v19 = vadd.f32 %v602_v17, %v2348_v15  ;;  %v644_v20 = vadd.f32 %v643_v18, %v2350_v16  ;;  %v672_v23 = vmax.f32 %v562_v12, 0.0  ;;  %783 = vmatmul.f32.gmra.mxu0 %v671_v21 }
 0x10a   : > { %v673_v24 = vmax.f32 %v603_v19, 0.0  ;;  %v674_v25 = vmax.f32 %v644_v20, 0.0  ;;  %824 = vmatmul.f32.gmra.mxu1 %v672_v23 }
 0x10b   : > { %v523_v26 = vpop.f32.mrf.mxu0 }
 0x10c   : > { %865 = vmatmul.f32.gmra.mxu2 %v673_v24  ;;  %906 = vmatmul.f32.gmra.mxu3 %v674_v25  ;;  %v524_v28 = vadd.f32 %v523_v26, %v2344_v13 }
 0x10d   : > { %v564_v27 = vpop.f32.mrf.mxu1 }
 0x10e   : > { %v565_v29 = vadd.f32 %v564_v27, %v2346_v14  ;;  %v675_v34 = vmax.f32 %v524_v28, 0.0 }
 0x10f   : > { %v605_v30 = vpop.f32.mrf.mxu2  ;;  %v646_v31 = vpop.f32.mrf.mxu3 }
 0x110   : > { %v606_v32 = vadd.f32 %v605_v30, %v2348_v15  ;;  %v647_v33 = vadd.f32 %v646_v31, %v2350_v16  ;;  %v676_v36 = vmax.f32 %v565_v29, 0.0  ;;  %786 = vmatmul.f32.gmra.mxu0 %v675_v34 }
 0x112   : > { %v677_v37 = vmax.f32 %v606_v32, 0.0  ;;  %v678_v38 = vmax.f32 %v647_v33, 0.0  ;;  %827 = vmatmul.f32.gmra.mxu1 %v676_v36 }
 0x113   : > { %v526_v39 = vpop.f32.mrf.mxu0 }
 0x114   : > { %868 = vmatmul.f32.gmra.mxu2 %v677_v37  ;;  %909 = vmatmul.f32.gmra.mxu3 %v678_v38  ;;  %v527_v41 = vadd.f32 %v526_v39, %v2344_v13 }
 0x115   : > { %v567_v40 = vpop.f32.mrf.mxu1 }
 0x116   : > { %v568_v42 = vadd.f32 %v567_v40, %v2346_v14  ;;  %v679_v47 = vmax.f32 %v527_v41, 0.0 }
 0x117   : > { %v608_v43 = vpop.f32.mrf.mxu2  ;;  %v649_v44 = vpop.f32.mrf.mxu3 }
 0x118   : > { %v609_v45 = vadd.f32 %v608_v43, %v2348_v15  ;;  %v650_v46 = vadd.f32 %v649_v44, %v2350_v16  ;;  %v680_v49 = vmax.f32 %v568_v42, 0.0  ;;  %789 = vmatmul.f32.gmra.mxu0 %v679_v47 }
 0x11a   : > { %v681_v50 = vmax.f32 %v609_v45, 0.0  ;;  %v682_v51 = vmax.f32 %v650_v46, 0.0  ;;  %830 = vmatmul.f32.gmra.mxu1 %v680_v49 }
 0x11b   : > { %v529_v52 = vpop.f32.mrf.mxu0 }
 0x11c   : > { %871 = vmatmul.f32.gmra.mxu2 %v681_v50  ;;  %912 = vmatmul.f32.gmra.mxu3 %v682_v51  ;;  %v530_v54 = vadd.f32 %v529_v52, %v2344_v13  ;;  %v2387_v13 = vld [vmem:[%s2586_s4] ss:$0 sm:$0xff] }
 0x11d   : > { %v570_v53 = vpop.f32.mrf.mxu1 }
 0x11e   : > { %v571_v55 = vadd.f32 %v570_v53, %v2346_v14  ;;  %v683_v61 = vmax.f32 %v530_v54, 0.0 }
 0x11f   : > { %v611_v56 = vpop.f32.mrf.mxu2  ;;  %v652_v57 = vpop.f32.mrf.mxu3 }
 0x120   : > { %v612_v58 = vadd.f32 %v611_v56, %v2348_v15  ;;  %v653_v59 = vadd.f32 %v652_v57, %v2350_v16  ;;  %v684_v63 = vmax.f32 %v571_v55, 0.0  ;;  %792 = vmatmul.f32.gmra.mxu0 %v683_v61 }
 0x122   : > { %v685_v0 = vmax.f32 %v612_v58, 0.0  ;;  %v686_v4 = vmax.f32 %v653_v59, 0.0  ;;  %833 = vmatmul.f32.gmra.mxu1 %v684_v63 }
 0x124   : > { %874 = vmatmul.f32.gmra.mxu2 %v685_v0  ;;  %915 = vmatmul.f32.gmra.mxu3 %v686_v4 }
 0x165   : > { %v772_v14 = vpop.f32.mrf.mxu0 }
 0x166   : > { %v773_v6 = vadd.f32 %v2387_v13, %v772_v14 }
 0x167   : > { %v813_v5 = vpop.f32.mrf.mxu1 }
 0x168   : > { %v814_v15 = vadd.f32 %v813_v5, %v773_v6 }
 0x16d   : > { %v775_v9 = vpop.f32.mrf.mxu0 }
 0x16e   : > { %v776_v11 = vadd.f32 %v2387_v13, %v775_v9 }
 0x16f   : > { %v854_v7 = vpop.f32.mrf.mxu2  ;;  %v895_v16 = vpop.f32.mrf.mxu3 }
 0x170   : > { %v855_v8 = vadd.f32 %v854_v7, %v814_v15  ;;  %v816_v10 = vpop.f32.mrf.mxu1 }
 0x171   : > { %v817_v18 = vadd.f32 %v816_v10, %v776_v11 }
 0x172   : > { %v2391_v12 = vadd.f32 %v895_v16, %v855_v8 }
 0x174   : > { %v919_v17 = vmul.f32 0.5, %v2391_v12 }
 0x175   : > { %v778_v24 = vpop.f32.mrf.mxu0 }
 0x176   : > { %v927_v19 = vmul.f32 1.442695, %v919_v17  ;;  %v779_v26 = vadd.f32 %v2387_v13, %v778_v24 }
 0x177   : > { %v857_v20 = vpop.f32.mrf.mxu2  ;;  %v898_v21 = vpop.f32.mrf.mxu3 }
 0x178   : > { %1804 = vpow2.f32 %v927_v19  ;;  %v858_v23 = vadd.f32 %v857_v20, %v817_v18  ;;  %v819_v25 = vpop.f32.mrf.mxu1 }
 0x179   : > { %v820_v29 = vadd.f32 %v819_v25, %v779_v26 }
 0x17a   : > { %v2395_v27 = vadd.f32 %v898_v21, %v858_v23 }
 0x17c   : > { %v920_v28 = vmul.f32 0.5, %v2395_v27 }
 0x17d   : > { %v781_v36 = vpop.f32.mrf.mxu0 }
 0x17e   : > { %v1805_v30 = vpop.eup %1804  ;;  %v929_v31 = vmul.f32 1.442695, %v920_v28  ;;  %v782_v38 = vadd.f32 %v2387_v13, %v781_v36 }
 0x17f   : > { %v860_v32 = vpop.f32.mrf.mxu2  ;;  %951 = vrot.lane.b32.xlu0 %v1805_v30, %s2089_s25  ;;  %v901_v33 = vpop.f32.mrf.mxu3 }
 0x180   : > { %1806 = vpow2.f32 %v929_v31  ;;  %v861_v34 = vadd.f32 %v860_v32, %v820_v29  ;;  %v822_v37 = vpop.f32.mrf.mxu1 }
 0x181   : > { %v823_v41 = vadd.f32 %v822_v37, %v782_v38 }
 0x182   : > { %v2400_v39 = vadd.f32 %v901_v33, %v861_v34 }
 0x184   : > { %v921_v40 = vmul.f32 0.5, %v2400_v39 }
 0x185   : > { %v784_v47 = vpop.f32.mrf.mxu0 }
 0x186   : > { %v1807_v42 = vpop.eup %1806  ;;  %v931_v43 = vmul.f32 1.442695, %v921_v40  ;;  %v785_v50 = vadd.f32 %v2387_v13, %v784_v47 }
 0x187   : > { %v863_v44 = vpop.f32.mrf.mxu2  ;;  %953 = vrot.lane.b32.xlu0 %v1807_v42, %s2089_s25  ;;  %v904_v45 = vpop.f32.mrf.mxu3 }
 0x188   : > { %1808 = vpow2.f32 %v931_v43  ;;  %v864_v46 = vadd.f32 %v863_v44, %v823_v41  ;;  %v825_v49 = vpop.f32.mrf.mxu1 }
 0x189   : > { %v826_v53 = vadd.f32 %v825_v49, %v785_v50 }
 0x18a   : > { %v2405_v51 = vadd.f32 %v904_v45, %v864_v46 }
 0x18c   : > { %v922_v52 = vmul.f32 0.5, %v2405_v51 }
 0x18d   : > { %v787_v59 = vpop.f32.mrf.mxu0 }
 0x18e   : > { %v1809_v54 = vpop.eup %1808  ;;  %v933_v55 = vmul.f32 1.442695, %v922_v52  ;;  %v788_v63 = vadd.f32 %v2387_v13, %v787_v59 }
 0x18f   : > { %v866_v56 = vpop.f32.mrf.mxu2  ;;  %955 = vrot.lane.b32.xlu1 %v1809_v54, %s2089_s25  ;;  %v907_v57 = vpop.f32.mrf.mxu3 }
 0x190   : > { %1810 = vpow2.f32 %v933_v55  ;;  %v867_v58 = vadd.f32 %v866_v56, %v826_v53  ;;  %v828_v61 = vpop.f32.mrf.mxu1 }
 0x191   : > { %v829_v14 = vadd.f32 %v828_v61, %v788_v63 }
 0x192   : > { %v2410_v0 = vadd.f32 %v907_v57, %v867_v58 }
 0x194   : > { %v923_v4 = vmul.f32 0.5, %v2410_v0 }
 0x195   : > { %v790_v8 = vpop.f32.mrf.mxu0 }
 0x196   : > { %v1811_v5 = vpop.eup %1810  ;;  %v935_v6 = vmul.f32 1.442695, %v923_v4  ;;  %v791_v9 = vadd.f32 %v2387_v13, %v790_v8  ;;  %v999_v4 = vld [vmem:[#allocation10 + $0x40] sm:$0xf]  ;;  %v993_v8 = vld [vmem:[#allocation10 + $0x10] sm:$0xff] }
 0x197   : > { %v869_v15 = vpop.f32.mrf.mxu2  ;;  %957 = vrot.lane.b32.xlu1 %v1811_v5, %s2089_s25  ;;  %v910_v7 = vpop.f32.mrf.mxu3  ;;  %1655 = vmatpush.msk.msra.mxu0 %vm1054_vm0, %v999_v4  ;;  %v1002_v5 = vld [vmem:[#allocation10 + $0x58] sm:$0xf] }
 0x198   : > { %1812 = vpow2.f32 %v935_v6  ;;  %v870_v16 = vadd.f32 %v869_v15, %v829_v14  ;;  %v831_v10 = vpop.f32.mrf.mxu1  ;;  %v995_v14 = vld [vmem:[#allocation10 + $0x20] sm:$0xff]  ;;  %v996_v6 = vld [vmem:[#allocation10 + $0x28] sm:$0xff]  ;;  %1682 = vmatpush.msk.msra.mxu3 %vm1054_vm0, %v1002_v5  ;;  %v997_v15 = vld [vmem:[#allocation10 + $0x30] sm:$0xff] }
 0x199   : > { %v832_v18 = vadd.f32 %v831_v10, %v791_v9  ;;  %1081 = vmatpush.msra.mxu0 %v995_v14  ;;  %v994_v9 = vld [vmem:[#allocation10 + $0x18] sm:$0xff]  ;;  %v1285_v14 = vld [vmem:[#allocation11 + $0xb0] sm:$0xff] }
 0x19a   : > { %v2415_v11 = vadd.f32 %v910_v7, %v870_v16  ;;  %v998_v7 = vld [vmem:[#allocation10 + $0x38] sm:$0xff]  ;;  %v991_v16 = vld [vmem:[#allocation10] sm:$0xff]  ;;  %v1317_v5 = vld [vmem:[#allocation11 + $0x1b0] sm:$0xff] }
 0x19b   : > { %1204 = vmatpush.msra.mxu3 %v998_v7  ;;  %1082 = vmatpush.msra.mxu0 %v991_v16  ;;  %v1300_v16 = vld [vmem:[#allocation11 + $0x128] sm:$0xff] }
 0x19c   : > { %v924_v17 = vmul.f32 0.5, %v2415_v11 }
 0x19d   : > { %v793_v31 = vpop.f32.mrf.mxu0  ;;  %1205 = vmatpush.msra.mxu3 %v994_v9  ;;  %v1283_v9 = vld [vmem:[#allocation11 + $0xa0] sm:$0xff] }
 0x19e   : > { %v1813_v19 = vpop.eup %1812  ;;  %v937_v20 = vmul.f32 1.442695, %v924_v17  ;;  %v794_v32 = vadd.f32 %v2387_v13, %v793_v31  ;;  %v1325_v31 = vld [vmem:[#allocation11 + $0x1f0] sm:$0xff] }
 0x19f   : > { %v872_v21 = vpop.f32.mrf.mxu2  ;;  %959 = vrot.lane.b32.xlu2 %v1813_v19, %s2089_s25  ;;  %v913_v23 = vpop.f32.mrf.mxu3 }
 0x1a0   : > { %1814 = vpow2.f32 %v937_v20  ;;  %v873_v24 = vadd.f32 %v872_v21, %v832_v18  ;;  %v834_v33 = vpop.f32.mrf.mxu1 }
 0x1a1   : > { %v835_v34 = vadd.f32 %v834_v33, %v794_v32  ;;  %v1276_v32 = vld [vmem:[#allocation11 + $0x68] sm:$0xff] }
 0x1a2   : > { %v2419_v25 = vadd.f32 %v913_v23, %v873_v24  ;;  %v1294_v23 = vld [vmem:[#allocation11 + $0xf8] sm:$0xff]  ;;  %v1292_v33 = vld [vmem:[#allocation11 + $0xe8] sm:$0xff] }
 0x1a3   : > { %v1310_v24 = vld [vmem:[#allocation11 + $0x178] sm:$0xff] }
 0x1a4   : > { %v925_v26 = vmul.f32 0.5, %v2419_v25 }
 0x1a6   : > { %v1815_v28 = vpop.eup %1814  ;;  %v939_v29 = vmul.f32 1.442695, %v925_v26  ;;  %v1326_v26 = vld [vmem:[#allocation11 + $0x1f8] sm:$0xff] }
 0x1a7   : > { %961 = vrot.lane.b32.xlu2 %v1815_v28, %s2089_s25  ;;  %v875_v36 = vpop.f32.mrf.mxu2  ;;  %v916_v38 = vpop.f32.mrf.mxu3  ;;  %v1277_v28 = vld [vmem:[#allocation11 + $0x70] sm:$0xff]  ;;  %1450 = vmatpush.msrb.mxu3 %v1326_v26 }
 0x1a8   : > { %1816 = vpow2.f32 %v939_v29  ;;  %v876_v37 = vadd.f32 %v875_v36, %v835_v34  ;;  %v1293_v29 = vld [vmem:[#allocation11 + $0xf0] sm:$0xff]  ;;  %v1308_v34 = vld [vmem:[#allocation11 + $0x168] sm:$0xff] }
 0x1a9   : > { %v1324_v36 = vld [vmem:[#allocation11 + $0x1e8] sm:$0xff]  ;;  %1451 = vmatpush.msrb.mxu3 %v1325_v31  ;;  %v1313_v26 = vld [vmem:[#allocation11 + $0x190] sm:$0xff] }
 0x1aa   : > { %v2425_v40 = vadd.f32 %v916_v38, %v876_v37  ;;  %v1275_v38 = vld [vmem:[#allocation11 + $0x60] sm:$0xff]  ;;  %v1312_v31 = vld [vmem:[#allocation11 + $0x188] sm:$0xff] }
 0x1ab   : > { %1452 = vmatpush.msrb.mxu3 %v1324_v36  ;;  %v1311_v36 = vld [vmem:[#allocation11 + $0x180] sm:$0xff] }
 0x1ac   : > { %v926_v41 = vmul.f32 0.5, %v2425_v40 }
 0x1ae   : > { %v1817_v30 = vpop.eup %1816  ;;  %v941_v44 = vmul.f32 1.442695, %v926_v41  ;;  %v1291_v41 = vld [vmem:[#allocation11 + $0xe0] sm:$0xff] }
 0x1af   : > { %963 = vrot.lane.b32.xlu1 %v1817_v30, %s2089_s25  ;;  %v1309_v30 = vld [vmem:[#allocation11 + $0x170] sm:$0xff] }
 0x1b0   : > { %1818 = vpow2.f32 %v941_v44  ;;  %v1274_v44 = vld [vmem:[#allocation11 + $0x58] sm:$0xff] }
 0x1b6   : > { %v1819_v50 = vpop.eup %1818 }
 0x1f1   : > { %v952_v42 = vpop.permute.xlu0 %951 }
 0x1f2   : > { %v975_v43 = vmul.f32 %v952_v42, %v2289_v60  ;;  %v1307_v42 = vld [vmem:[#allocation11 + $0x160] sm:$0xff] }
 0x1f4   : > { %v983_v45 = vadd.f32 %v975_v43, %v2391_v12  ;;  %v1323_v43 = vld [vmem:[#allocation11 + $0x1e0] sm:$0xff] }
 0x1f5   : > { %1453 = vmatpush.msrb.mxu3 %v1323_v43 }
 0x1f6   : > { %1021 = vrot.lane.b32.xlu0 %v983_v45, %s2090_s19  ;;  %v1290_v45 = vld [vmem:[#allocation11 + $0xd8] sm:$0xff] }
 0x1f9   : > { %v954_v13 = vpop.permute.xlu0 %953  ;;  %v960_v47 = vpop.permute.xlu2 %959 }
 0x1fa   : > { %v976_v46 = vmul.f32 %v954_v13, %v2296_v1  ;;  %v979_v60 = vmul.f32 %v960_v47, %v2317_v22  ;;  %v1306_v13 = vld [vmem:[#allocation11 + $0x158] sm:$0xff]  ;;  %v1273_v47 = vld [vmem:[#allocation11 + $0x50] sm:$0xff] }
 0x1fc   : > { %v984_v49 = vadd.f32 %v976_v46, %v2395_v27  ;;  %v987_v54 = vadd.f32 %v979_v60, %v2410_v0  ;;  %v1322_v46 = vld [vmem:[#allocation11 + $0x1d8] sm:$0xff]  ;;  %v1321_v60 = vld [vmem:[#allocation11 + $0x1d0] sm:$0xff] }
 0x1fd   : > { %1454 = vmatpush.msrb.mxu3 %v1322_v46 }
 0x1fe   : > { %965 = vrot.lane.b32.xlu0 %v1819_v50, %s2089_s25  ;;  %1023 = vrot.lane.b32.xlu2 %v984_v49, %s2090_s19  ;;  %v1289_v49 = vld [vmem:[#allocation11 + $0xd0] sm:$0xff] }
 0x1ff   : > { %v1305_v50 = vld [vmem:[#allocation11 + $0x150] sm:$0xff]  ;;  %1455 = vmatpush.msrb.mxu3 %v1321_v60 }
 0x201   : > { %v956_v52 = vpop.permute.xlu1 %955  ;;  %v962_v56 = vpop.permute.xlu2 %961 }
 0x202   : > { %v977_v53 = vmul.f32 %v956_v52, %v2303_v2  ;;  %v980_v1 = vmul.f32 %v962_v56, %v2324_v35  ;;  %v1000_v35 = vld [vmem:[#allocation10 + $0x48] sm:$0xf] }
 0x203   : > { %1664 = vmatpush.msk.msra.mxu1 %vm1054_vm0, %v1000_v35  ;;  %v1320_v56 = vld [vmem:[#allocation11 + $0x1c8] sm:$0xff]  ;;  %v1269_v35 = vld [vmem:[#allocation11 + $0x30] sm:$0xff] }
 0x204   : > { %v985_v55 = vadd.f32 %v977_v53, %v2400_v39  ;;  %v988_v59 = vadd.f32 %v980_v1, %v2415_v11  ;;  %v1272_v53 = vld [vmem:[#allocation11 + $0x48] sm:$0xff]  ;;  %v1271_v1 = vld [vmem:[#allocation11 + $0x40] sm:$0xff]  ;;  %1456 = vmatpush.msrb.mxu3 %v1320_v56 }
 0x205   : > { %1122 = vmatpush.msra.mxu1 %v996_v6  ;;  %v1268_v6 = vld [vmem:[#allocation11 + $0x28] sm:$0xff] }
 0x206   : > { %1025 = vrot.lane.b32.xlu1 %v985_v55, %s2090_s19  ;;  %1029 = vrot.lane.b32.xlu0 %v987_v54, %s2090_s19  ;;  %v1288_v54 = vld [vmem:[#allocation11 + $0xc8] sm:$0xff] }
 0x207   : > { %v1304_v55 = vld [vmem:[#allocation11 + $0x148] sm:$0xff] }
 0x209   : > { %v958_v57 = vpop.permute.xlu1 %957 }
 0x20a   : > { %v978_v58 = vmul.f32 %v958_v57, %v2308_v3  ;;  %v1001_v3 = vld [vmem:[#allocation10 + $0x50] sm:$0xf]  ;;  %v1287_v57 = vld [vmem:[#allocation11 + $0xc0] sm:$0xff] }
 0x20b   : > { %1673 = vmatpush.msk.msra.mxu2 %vm1054_vm0, %v1001_v3  ;;  %v1301_v3 = vld [vmem:[#allocation11 + $0x130] sm:$0xff] }
 0x20c   : > { %v986_v22 = vadd.f32 %v978_v58, %v2405_v51  ;;  %v1303_v58 = vld [vmem:[#allocation11 + $0x140] sm:$0xff] }
 0x20d   : > { %1163 = vmatpush.msra.mxu2 %v997_v15  ;;  %v1284_v15 = vld [vmem:[#allocation11 + $0xa8] sm:$0xff] }
 0x20e   : > { %1031 = vrot.lane.b32.xlu1 %v988_v59, %s2090_s19  ;;  %1027 = vrot.lane.b32.xlu2 %v986_v22, %s2090_s19  ;;  %v1319_v59 = vld [vmem:[#allocation11 + $0x1c0] sm:$0xff]  ;;  %v1270_v22 = vld [vmem:[#allocation11 + $0x38] sm:$0xff] }
 0x20f   : > { %1164 = vmatpush.msra.mxu2 %v993_v8  ;;  %1457 = vmatpush.msrb.mxu3 %v1319_v59  ;;  %v1267_v8 = vld [vmem:[#allocation11 + $0x20] sm:$0xff] }
 0x211   : > { %1409 = vmatpush.msrb.mxu2 %v1310_v24  ;;  %v1297_v24 = vld [vmem:[#allocation11 + $0x110] sm:$0xff] }
 0x213   : > { %1410 = vmatpush.msrb.mxu2 %v1309_v30  ;;  %v1296_v30 = vld [vmem:[#allocation11 + $0x108] sm:$0xff] }
 0x215   : > { %1411 = vmatpush.msrb.mxu2 %v1308_v34  ;;  %v1295_v34 = vld [vmem:[#allocation11 + $0x100] sm:$0xff] }
 0x217   : > { %1412 = vmatpush.msrb.mxu2 %v1307_v42 }
 0x219   : > { %1413 = vmatpush.msrb.mxu2 %v1306_v13 }
 0x21b   : > { %1414 = vmatpush.msrb.mxu2 %v1305_v50 }
 0x21d   : > { %1415 = vmatpush.msrb.mxu2 %v1304_v55 }
 0x21f   : > { %1416 = vmatpush.msrb.mxu2 %v1303_v58 }
 0x221   : > { %v964_v2 = vpop.permute.xlu1 %963 }
 0x222   : > { %v981_v61 = vmul.f32 %v964_v2, %v2331_v48  ;;  %v992_v48 = vld [vmem:[#allocation10 + $0x8] sm:$0xff]  ;;  %v1286_v2 = vld [vmem:[#allocation11 + $0xb8] sm:$0xff] }
 0x223   : > { %1123 = vmatpush.msra.mxu1 %v992_v48  ;;  %v1316_v48 = vld [vmem:[#allocation11 + $0x1a8] sm:$0xff] }
 0x224   : > { %v989_v63 = vadd.f32 %v981_v61, %v2419_v25  ;;  %v1302_v61 = vld [vmem:[#allocation11 + $0x138] sm:$0xff] }
 0x225   : > { %1368 = vmatpush.msrb.mxu1 %v1294_v23  ;;  %1417 = vmatpush.msrb.mxu2 %v1302_v61  ;;  %v1281_v23 = vld [vmem:[#allocation11 + $0x90] sm:$0xff] }
 0x226   : > { %1033 = vrot.lane.b32.xlu2 %v989_v63, %s2090_s19  ;;  %v1318_v63 = vld [vmem:[#allocation11 + $0x1b8] sm:$0xff] }
 0x227   : > { %1369 = vmatpush.msrb.mxu1 %v1293_v29  ;;  %1458 = vmatpush.msrb.mxu3 %v1318_v63  ;;  %v1280_v29 = vld [vmem:[#allocation11 + $0x88] sm:$0xff] }
 0x228   : > { %1418 = vmatpush.msrb.mxu2 %v1301_v3 }
 0x229   : > { %1370 = vmatpush.msrb.mxu1 %v1292_v33  ;;  %1459 = vmatpush.msrb.mxu3 %v1317_v5  ;;  %v1279_v33 = vld [vmem:[#allocation11 + $0x80] sm:$0xff] }
 0x22a   : > { %1419 = vmatpush.msrb.mxu2 %v1300_v16 }
 0x22b   : > { %1371 = vmatpush.msrb.mxu1 %v1291_v41  ;;  %1460 = vmatpush.msrb.mxu3 %v1316_v48 }
 0x22d   : > { %1372 = vmatpush.msrb.mxu1 %v1290_v45 }
 0x22f   : > { %1373 = vmatpush.msrb.mxu1 %v1289_v49 }
 0x231   : > { %1374 = vmatpush.msrb.mxu1 %v1288_v54 }
 0x233   : > { %1375 = vmatpush.msrb.mxu1 %v1287_v57 }
 0x235   : > { %1376 = vmatpush.msrb.mxu1 %v1286_v2 }
 0x237   : > { %1377 = vmatpush.msrb.mxu1 %v1285_v14 }
 0x239   : > { %1378 = vmatpush.msrb.mxu1 %v1284_v15 }
 0x23b   : > { %1379 = vmatpush.msrb.mxu1 %v1283_v9 }
 0x258   : > { %v1024_v17 = vpop.permute.xlu2 %1023 }
 0x268   : > { %v1022_v10 = vpop.permute.xlu0 %1021  ;;  %v1028_v37 = vpop.permute.xlu2 %1027 }
 0x269   : > { %1656 = vmatmul.msk.f32.vlgmr.msra.gmra.mxu0 %vm1037_vm1, %v1022_v10  ;;  %1665 = vmatmul.msk.f32.vlgmr.msra.gmra.mxu1 %vm1037_vm1, %v1022_v10 }
 0x26a   : > { %1674 = vmatmul.msk.f32.vlgmr.msra.gmra.mxu2 %vm1037_vm1, %v1022_v10  ;;  %1683 = vmatmul.msk.f32.vlgmr.msra.gmra.mxu3 %vm1037_vm1, %v1022_v10  ;;  %v1299_v10 = vld [vmem:[#allocation11 + $0x120] sm:$0xff] }
 0x26b   : > { %1420 = vmatpush.msrb.mxu2 %v1299_v10 }
 0x270   : > { %v966_v18 = vpop.permute.xlu0 %965 }
 0x271   : > { %v982_v19 = vmul.f32 %v966_v18, %v2338_v62  ;;  %1657 = vmatmul.msk.f32.gmra.mxu0 %vm1037_vm1, %v1024_v17  ;;  %1666 = vmatmul.msk.f32.gmra.mxu1 %vm1037_vm1, %v1024_v17  ;;  %v1278_v62 = vld [vmem:[#allocation11 + $0x78] sm:$0xff] }
 0x272   : > { %1675 = vmatmul.msk.f32.gmra.mxu2 %vm1037_vm1, %v1024_v17  ;;  %1684 = vmatmul.msk.f32.gmra.mxu3 %vm1037_vm1, %v1024_v17  ;;  %v1315_v17 = vld [vmem:[#allocation11 + $0x1a0] sm:$0xff]  ;;  %v1266_v18 = vld [vmem:[#allocation11 + $0x18] sm:$0xff] }
 0x273   : > { %v990_v20 = vadd.f32 %v982_v19, %v2425_v40  ;;  %1327 = vmatpush.msrb.mxu0 %v1278_v62  ;;  %1461 = vmatpush.msrb.mxu3 %v1315_v17  ;;  %v1282_v19 = vld [vmem:[#allocation11 + $0x98] sm:$0xff]  ;;  %v1265_v62 = vld [vmem:[#allocation11 + $0x10] sm:$0xff] }
 0x274   : > { %1380 = vmatpush.msrb.mxu1 %v1282_v19 }
 0x275   : > { %1035 = vrot.lane.b32.xlu0 %v990_v20, %s2090_s19  ;;  %1328 = vmatpush.msrb.mxu0 %v1277_v28  ;;  %v1298_v20 = vld [vmem:[#allocation11 + $0x118] sm:$0xff]  ;;  %v1264_v28 = vld [vmem:[#allocation11 + $0x8] sm:$0xff]  ;;  %s2020_s19 = scalar_lea.hbm %s2590_s8, 128 }
 0x276   : > { %1421 = vmatpush.msrb.mxu2 %v1298_v20  ;;  %1381 = vmatpush.msrb.mxu1 %v1281_v23  ;;  %p2022_p8 = scmp.lt.s32.totalorder %s2020_s19, %s2016_s13 }
 0x277   : > { %1329 = vmatpush.msrb.mxu0 %v1276_v32  ;;  %v1263_v32 = vld [vmem:[#allocation11] sm:$0xff] }
 0x278   : > { %v1026_v21 = vpop.permute.xlu1 %1025  ;;  %v1030_v52 = vpop.permute.xlu0 %1029  ;;  %1422 = vmatpush.msrb.mxu2 %v1297_v24  ;;  %1382 = vmatpush.msrb.mxu1 %v1280_v29  ;;  %p2023_p7 = por %p2022_p8, %p2021_p12 }
 0x279   : > { %1658 = vmatmul.msk.f32.gmra.mxu0 %vm1037_vm1, %v1026_v21  ;;  %1667 = vmatmul.msk.f32.gmra.mxu1 %vm1037_vm1, %v1026_v21 }
 0x27a   : > { %1676 = vmatmul.msk.f32.gmra.mxu2 %vm1037_vm1, %v1026_v21  ;;  %1685 = vmatmul.msk.f32.gmra.mxu3 %vm1037_vm1, %v1026_v21  ;;  %v1314_v21 = vld [vmem:[#allocation11 + $0x198] sm:$0xff]  ;;  %p2024_p9 = pnand %p2023_p7, %p2019_p5 }
 0x27b   : > { %1330 = vmatpush.msrb.mxu0 %v1275_v38  ;;  %1462 = vmatpush.msrb.mxu3 %v1314_v21 }
 0x27c   : > { %1423 = vmatpush.msrb.mxu2 %v1296_v30  ;;  %1383 = vmatpush.msrb.mxu1 %v1279_v33 }
 0x27d   : > { %1331 = vmatpush.msrb.mxu0 %v1274_v44  ;;  %1463 = vmatpush.msrb.mxu3 %v1313_v26 }
 0x27e   : > { %1424 = vmatpush.msrb.mxu2 %v1295_v34 }
 0x27f   : > { %1332 = vmatpush.msrb.mxu0 %v1273_v47  ;;  %1464 = vmatpush.msrb.mxu3 %v1312_v31 }
 0x280   : > { %v1032_v4 = vpop.permute.xlu1 %1031  ;;  %v1034_v7 = vpop.permute.xlu2 %1033 }
 0x281   : > { %1659 = vmatmul.msk.f32.gmra.mxu0 %vm1037_vm1, %v1028_v37  ;;  %1668 = vmatmul.msk.f32.gmra.mxu1 %vm1037_vm1, %v1028_v37 }
 0x282   : > { %1677 = vmatmul.msk.f32.gmra.mxu2 %vm1037_vm1, %v1028_v37  ;;  %1686 = vmatmul.msk.f32.gmra.mxu3 %vm1037_vm1, %v1028_v37  ;;  %v1003_v37 = vld [vmem:[%s2588_s6] sm:$0xf] }
 0x283   : > { %1333 = vmatpush.msrb.mxu0 %v1272_v53  ;;  %1465 = vmatpush.msrb.mxu3 %v1311_v36  ;;  %v2484_v38 = vperm.slane %v1003_v37, 0  ;;  %v2486_v42 = vperm.slane %v1003_v37, 1  ;;  %v2494_v46 = vperm.slane %v1003_v37, 2  ;;  %v2496_v47 = vperm.slane %v1003_v37, 3 }
 0x285   : > { %1334 = vmatpush.msrb.mxu0 %v1271_v1 }
 0x287   : > { %1335 = vmatpush.msrb.mxu0 %v1270_v22 }
 0x289   : > { %1660 = vmatmul.msk.f32.gmra.mxu0 %vm1037_vm1, %v1030_v52  ;;  %1669 = vmatmul.msk.f32.gmra.mxu1 %vm1037_vm1, %v1030_v52 }
 0x28a   : > { %1678 = vmatmul.msk.f32.gmra.mxu2 %vm1037_vm1, %v1030_v52  ;;  %1687 = vmatmul.msk.f32.gmra.mxu3 %vm1037_vm1, %v1030_v52 }
 0x28b   : > { %1336 = vmatpush.msrb.mxu0 %v1269_v35 }
 0x28d   : > { %1337 = vmatpush.msrb.mxu0 %v1268_v6 }
 0x28f   : > { %1338 = vmatpush.msrb.mxu0 %v1267_v8 }
 0x291   : > { %1661 = vmatmul.msk.f32.gmra.mxu0 %vm1037_vm1, %v1032_v4  ;;  %1670 = vmatmul.msk.f32.gmra.mxu1 %vm1037_vm1, %v1032_v4 }
 0x292   : > { %1679 = vmatmul.msk.f32.gmra.mxu2 %vm1037_vm1, %v1032_v4  ;;  %1688 = vmatmul.msk.f32.gmra.mxu3 %vm1037_vm1, %v1032_v4 }
 0x293   : > { %1339 = vmatpush.msrb.mxu0 %v1266_v18 }
 0x295   : > { %1340 = vmatpush.msrb.mxu0 %v1265_v62 }
 0x297   : > { %1341 = vmatpush.msrb.mxu0 %v1264_v28 }
 0x299   : > { %1662 = vmatmul.msk.f32.gmra.mxu0 %vm1037_vm1, %v1034_v7  ;;  %1671 = vmatmul.msk.f32.gmra.mxu1 %vm1037_vm1, %v1034_v7 }
 0x29a   : > { %1680 = vmatmul.msk.f32.gmra.mxu2 %vm1037_vm1, %v1034_v7  ;;  %1689 = vmatmul.msk.f32.gmra.mxu3 %vm1037_vm1, %v1034_v7 }
 0x29b   : > { %1342 = vmatpush.msrb.mxu0 %v1263_v32 }
 0x2e6   : > { %v1084_v41 = vpop.f32.mrf.mxu0  ;;  %v1125_v43 = vpop.f32.mrf.mxu1 }
 0x2e7   : > { %v1036_v44 = vpop.permute.xlu0 %1035  ;;  %v1085_v45 = vadd.f32 %v1084_v41, %v2484_v38  ;;  %v1126_v13 = vadd.f32 %v1125_v43, %v2486_v42 }
 0x2e8   : > { %1663 = vmatmul.msk.f32.gmra.mxu0 %vm1037_vm1, %v1036_v44  ;;  %1672 = vmatmul.msk.f32.gmra.mxu1 %vm1037_vm1, %v1036_v44 }
 0x2e9   : > { %1681 = vmatmul.msk.f32.gmra.mxu2 %vm1037_vm1, %v1036_v44  ;;  %1690 = vmatmul.msk.f32.gmra.mxu3 %vm1037_vm1, %v1036_v44  ;;  %v1231_v60 = vmax.f32 %v1085_v45, 0.0  ;;  %v1232_v52 = vmax.f32 %v1126_v13, 0.0 }
 0x2ed   : > { %v1166_v49 = vpop.f32.mrf.mxu2  ;;  %v1207_v50 = vpop.f32.mrf.mxu3 }
 0x2ee   : > { %v1167_v53 = vadd.f32 %v1166_v49, %v2494_v46  ;;  %v1208_v54 = vadd.f32 %v1207_v50, %v2496_v47  ;;  %v1087_v55 = vpop.f32.mrf.mxu0  ;;  %v1128_v56 = vpop.f32.mrf.mxu1 }
 0x2ef   : > { %v1088_v58 = vadd.f32 %v1087_v55, %v2484_v38  ;;  %v1129_v59 = vadd.f32 %v1128_v56, %v2486_v42 }
 0x2f0   : > { %v1233_v1 = vmax.f32 %v1167_v53, 0.0  ;;  %v1234_v57 = vmax.f32 %v1208_v54, 0.0  ;;  %1343 = vmatmul.f32.vlgmr.msrb.gmra.mxu0 %v1231_v60  ;;  %1384 = vmatmul.f32.vlgmr.msrb.gmra.mxu1 %v1232_v52 }
 0x2f1   : > { %v1235_v61 = vmax.f32 %v1088_v58, 0.0  ;;  %v1236_v63 = vmax.f32 %v1129_v59, 0.0 }
 0x2f2   : > { %1425 = vmatmul.f32.vlgmr.msrb.gmra.mxu2 %v1233_v1  ;;  %1466 = vmatmul.f32.vlgmr.msrb.gmra.mxu3 %v1234_v57 }
 0x2f5   : > { %v1169_v22 = vpop.f32.mrf.mxu2  ;;  %v1210_v2 = vpop.f32.mrf.mxu3 }
 0x2f6   : > { %v1170_v4 = vadd.f32 %v1169_v22, %v2494_v46  ;;  %v1211_v35 = vadd.f32 %v1210_v2, %v2496_v47  ;;  %v1090_v14 = vpop.f32.mrf.mxu0  ;;  %v1131_v3 = vpop.f32.mrf.mxu1 }
 0x2f7   : > { %v1091_v15 = vadd.f32 %v1090_v14, %v2484_v38  ;;  %v1132_v7 = vadd.f32 %v1131_v3, %v2486_v42 }
 0x2f8   : > { %v1237_v5 = vmax.f32 %v1170_v4, 0.0  ;;  %v1238_v6 = vmax.f32 %v1211_v35, 0.0  ;;  %1346 = vmatmul.f32.gmra.mxu0 %v1235_v61  ;;  %1387 = vmatmul.f32.gmra.mxu1 %v1236_v63 }
 0x2f9   : > { %v1239_v8 = vmax.f32 %v1091_v15, 0.0  ;;  %v1240_v9 = vmax.f32 %v1132_v7, 0.0 }
 0x2fa   : > { %1428 = vmatmul.f32.gmra.mxu2 %v1237_v5  ;;  %1469 = vmatmul.f32.gmra.mxu3 %v1238_v6 }
 0x2fd   : > { %v1172_v16 = vpop.f32.mrf.mxu2  ;;  %v1213_v48 = vpop.f32.mrf.mxu3 }
 0x2fe   : > { %v1173_v10 = vadd.f32 %v1172_v16, %v2494_v46  ;;  %v1214_v17 = vadd.f32 %v1213_v48, %v2496_v47  ;;  %v1093_v18 = vpop.f32.mrf.mxu0  ;;  %v1134_v19 = vpop.f32.mrf.mxu1 }
 0x2ff   : > { %v1094_v62 = vadd.f32 %v1093_v18, %v2484_v38  ;;  %v1135_v23 = vadd.f32 %v1134_v19, %v2486_v42 }
 0x300   : > { %v1241_v20 = vmax.f32 %v1173_v10, 0.0  ;;  %v1242_v21 = vmax.f32 %v1214_v17, 0.0  ;;  %1349 = vmatmul.f32.gmra.mxu0 %v1239_v8  ;;  %1390 = vmatmul.f32.gmra.mxu1 %v1240_v9 }
 0x301   : > { %v1243_v28 = vmax.f32 %v1094_v62, 0.0  ;;  %v1244_v29 = vmax.f32 %v1135_v23, 0.0 }
 0x302   : > { %1431 = vmatmul.f32.gmra.mxu2 %v1241_v20  ;;  %1472 = vmatmul.f32.gmra.mxu3 %v1242_v21 }
 0x305   : > { %v1175_v24 = vpop.f32.mrf.mxu2  ;;  %v1216_v26 = vpop.f32.mrf.mxu3 }
 0x306   : > { %v1176_v30 = vadd.f32 %v1175_v24, %v2494_v46  ;;  %v1217_v31 = vadd.f32 %v1216_v26, %v2496_v47  ;;  %v1096_v32 = vpop.f32.mrf.mxu0  ;;  %v1137_v33 = vpop.f32.mrf.mxu1 }
 0x307   : > { %v1097_v37 = vadd.f32 %v1096_v32, %v2484_v38  ;;  %v1138_v41 = vadd.f32 %v1137_v33, %v2486_v42 }
 0x308   : > { %v1245_v34 = vmax.f32 %v1176_v30, 0.0  ;;  %v1246_v36 = vmax.f32 %v1217_v31, 0.0  ;;  %1352 = vmatmul.f32.gmra.mxu0 %v1243_v28  ;;  %1393 = vmatmul.f32.gmra.mxu1 %v1244_v29 }
 0x309   : > { %v1247_v45 = vmax.f32 %v1097_v37, 0.0  ;;  %v1248_v13 = vmax.f32 %v1138_v41, 0.0 }
 0x30a   : > { %1434 = vmatmul.f32.gmra.mxu2 %v1245_v34  ;;  %1475 = vmatmul.f32.gmra.mxu3 %v1246_v36 }
 0x30d   : > { %v1178_v43 = vpop.f32.mrf.mxu2  ;;  %v1219_v44 = vpop.f32.mrf.mxu3 }
 0x30e   : > { %v1179_v49 = vadd.f32 %v1178_v43, %v2494_v46  ;;  %v1220_v50 = vadd.f32 %v1219_v44, %v2496_v47  ;;  %v1099_v60 = vpop.f32.mrf.mxu0  ;;  %v1140_v52 = vpop.f32.mrf.mxu1 }
 0x30f   : > { %v1100_v55 = vadd.f32 %v1099_v60, %v2484_v38  ;;  %v1141_v56 = vadd.f32 %v1140_v52, %v2486_v42 }
 0x310   : > { %v1249_v53 = vmax.f32 %v1179_v49, 0.0  ;;  %v1250_v54 = vmax.f32 %v1220_v50, 0.0  ;;  %1355 = vmatmul.f32.gmra.mxu0 %v1247_v45  ;;  %1396 = vmatmul.f32.gmra.mxu1 %v1248_v13 }
 0x311   : > { %v1251_v58 = vmax.f32 %v1100_v55, 0.0  ;;  %v1252_v59 = vmax.f32 %v1141_v56, 0.0 }
 0x312   : > { %1437 = vmatmul.f32.gmra.mxu2 %v1249_v53  ;;  %1478 = vmatmul.f32.gmra.mxu3 %v1250_v54 }
 0x315   : > { %v1181_v1 = vpop.f32.mrf.mxu2  ;;  %v1222_v57 = vpop.f32.mrf.mxu3 }
 0x316   : > { %v1182_v22 = vadd.f32 %v1181_v1, %v2494_v46  ;;  %v1223_v2 = vadd.f32 %v1222_v57, %v2496_v47  ;;  %v1102_v61 = vpop.f32.mrf.mxu0  ;;  %v1143_v63 = vpop.f32.mrf.mxu1 }
 0x317   : > { %v1103_v14 = vadd.f32 %v1102_v61, %v2484_v38  ;;  %v1144_v3 = vadd.f32 %v1143_v63, %v2486_v42 }
 0x318   : > { %v1253_v4 = vmax.f32 %v1182_v22, 0.0  ;;  %v1254_v35 = vmax.f32 %v1223_v2, 0.0  ;;  %1358 = vmatmul.f32.gmra.mxu0 %v1251_v58  ;;  %1399 = vmatmul.f32.gmra.mxu1 %v1252_v59 }
 0x319   : > { %v1255_v15 = vmax.f32 %v1103_v14, 0.0  ;;  %v1256_v7 = vmax.f32 %v1144_v3, 0.0 }
 0x31a   : > { %1440 = vmatmul.f32.gmra.mxu2 %v1253_v4  ;;  %1481 = vmatmul.f32.gmra.mxu3 %v1254_v35 }
 0x31d   : > { %v1184_v5 = vpop.f32.mrf.mxu2  ;;  %v1225_v6 = vpop.f32.mrf.mxu3 }
 0x31e   : > { %v1185_v16 = vadd.f32 %v1184_v5, %v2494_v46  ;;  %v1226_v48 = vadd.f32 %v1225_v6, %v2496_v47 }
 0x320   : > { %v1257_v8 = vmax.f32 %v1185_v16, 0.0  ;;  %v1258_v9 = vmax.f32 %v1226_v48, 0.0  ;;  %1361 = vmatmul.f32.gmra.mxu0 %v1255_v15  ;;  %1402 = vmatmul.f32.gmra.mxu1 %v1256_v7 }
 0x322   : > { %1443 = vmatmul.f32.gmra.mxu2 %v1257_v8  ;;  %1484 = vmatmul.f32.gmra.mxu3 %v1258_v9 }
 0x365   : > { %v1105_v10 = vpop.f32.mrf.mxu0  ;;  %v1146_v17 = vpop.f32.mrf.mxu1 }
 0x366   : > { %v1106_v18 = vadd.f32 %v1105_v10, %v2484_v38  ;;  %v1147_v19 = vadd.f32 %v1146_v17, %v2486_v42 }
 0x368   : > { %v1259_v20 = vmax.f32 %v1106_v18, 0.0  ;;  %v1260_v21 = vmax.f32 %v1147_v19, 0.0 }
 0x36a   : > { %1364 = vmatmul.f32.gmra.mxu0 %v1259_v20  ;;  %1405 = vmatmul.f32.gmra.mxu1 %v1260_v21 }
 0x36c   : > { %v1187_v62 = vpop.f32.mrf.mxu2  ;;  %v1228_v23 = vpop.f32.mrf.mxu3 }
 0x36d   : > { %v1188_v24 = vadd.f32 %v1187_v62, %v2494_v46  ;;  %v1229_v26 = vadd.f32 %v1228_v23, %v2496_v47  ;;  %v1344_v28 = vpop.f32.mrf.mxu0  ;;  %v1385_v29 = vpop.f32.mrf.mxu1 }
 0x36e   : > { %v1345_v32 = vadd.f32 %v1344_v28, %v2391_v12 }
 0x36f   : > { %v1261_v30 = vmax.f32 %v1188_v24, 0.0  ;;  %v1262_v31 = vmax.f32 %v1229_v26, 0.0 }
 0x370   : > { %v1386_v38 = vadd.f32 %v1385_v29, %v1345_v32 }
 0x371   : > { %1446 = vmatmul.f32.gmra.mxu2 %v1261_v30  ;;  %1487 = vmatmul.f32.gmra.mxu3 %v1262_v31 }
 0x375   : > { %v1426_v42 = vpop.f32.mrf.mxu2  ;;  %v1467_v33 = vpop.f32.mrf.mxu3 }
 0x376   : > { %v1427_v34 = vadd.f32 %v1426_v42, %v1386_v38  ;;  %v1347_v36 = vpop.f32.mrf.mxu0  ;;  %v1388_v37 = vpop.f32.mrf.mxu1 }
 0x377   : > { %v1348_v46 = vadd.f32 %v1347_v36, %v2395_v27 }
 0x378   : > { %v1468_v41 = vadd.f32 %v1467_v33, %v1427_v34 }
 0x379   : > { %v1389_v47 = vadd.f32 %v1388_v37, %v1348_v46 }
 0x37a   : > { %1491 = vst [vmem:[%s2532_s21] sm:$0xff] %v1468_v41 }
 0x37d   : > { %v1429_v43 = vpop.f32.mrf.mxu2  ;;  %v1470_v12 = vpop.f32.mrf.mxu3 }
 0x37e   : > { %v1430_v44 = vadd.f32 %v1429_v43, %v1389_v47  ;;  %v1350_v45 = vpop.f32.mrf.mxu0  ;;  %v1391_v13 = vpop.f32.mrf.mxu1 }
 0x37f   : > { %v1351_v50 = vadd.f32 %v1350_v45, %v2400_v39 }
 0x380   : > { %v1471_v49 = vadd.f32 %v1470_v12, %v1430_v44 }
 0x381   : > { %v1392_v60 = vadd.f32 %v1391_v13, %v1351_v50 }
 0x382   : > { %1492 = vst [vmem:[%s2532_s21 + $0x8] sm:$0xff] %v1471_v49 }
 0x385   : > { %v1432_v52 = vpop.f32.mrf.mxu2  ;;  %v1473_v27 = vpop.f32.mrf.mxu3 }
 0x386   : > { %v1433_v53 = vadd.f32 %v1432_v52, %v1392_v60  ;;  %v1353_v54 = vpop.f32.mrf.mxu0  ;;  %v1394_v55 = vpop.f32.mrf.mxu1 }
 0x387   : > { %v1354_v1 = vadd.f32 %v1353_v54, %v2405_v51 }
 0x388   : > { %v1474_v56 = vadd.f32 %v1473_v27, %v1433_v53 }
 0x389   : > { %v1395_v57 = vadd.f32 %v1394_v55, %v1354_v1 }
 0x38a   : > { %1493 = vst [vmem:[%s2532_s21 + $0x10] sm:$0xff] %v1474_v56 }
 0x38d   : > { %v1435_v58 = vpop.f32.mrf.mxu2  ;;  %v1476_v59 = vpop.f32.mrf.mxu3 }
 0x38e   : > { %v1436_v22 = vadd.f32 %v1435_v58, %v1395_v57  ;;  %v1356_v2 = vpop.f32.mrf.mxu0  ;;  %v1397_v61 = vpop.f32.mrf.mxu1 }
 0x38f   : > { %v1357_v63 = vadd.f32 %v1356_v2, %v2410_v0 }
 0x390   : > { %v1477_v39 = vadd.f32 %v1476_v59, %v1436_v22 }
 0x391   : > { %v1398_v4 = vadd.f32 %v1397_v61, %v1357_v63 }
 0x392   : > { %1494 = vst [vmem:[%s2532_s21 + $0x18] sm:$0xff] %v1477_v39 }
 0x395   : > { %v1438_v35 = vpop.f32.mrf.mxu2  ;;  %v1479_v14 = vpop.f32.mrf.mxu3 }
 0x396   : > { %v1439_v3 = vadd.f32 %v1438_v35, %v1398_v4  ;;  %v1359_v5 = vpop.f32.mrf.mxu0  ;;  %v1400_v15 = vpop.f32.mrf.mxu1 }
 0x397   : > { %v1360_v51 = vadd.f32 %v1359_v5, %v2415_v11 }
 0x398   : > { %v1480_v6 = vadd.f32 %v1479_v14, %v1439_v3 }
 0x399   : > { %v1401_v7 = vadd.f32 %v1400_v15, %v1360_v51 }
 0x39a   : > { %1495 = vst [vmem:[%s2532_s21 + $0x20] sm:$0xff] %v1480_v6 }
 0x39d   : > { %v1441_v16 = vpop.f32.mrf.mxu2  ;;  %v1482_v48 = vpop.f32.mrf.mxu3 }
 0x39e   : > { %v1442_v8 = vadd.f32 %v1441_v16, %v1401_v7  ;;  %v1362_v0 = vpop.f32.mrf.mxu0  ;;  %v1403_v17 = vpop.f32.mrf.mxu1 }
 0x39f   : > { %v1363_v10 = vadd.f32 %v1362_v0, %v2419_v25 }
 0x3a0   : > { %v1483_v9 = vadd.f32 %v1482_v48, %v1442_v8 }
 0x3a1   : > { %v1404_v18 = vadd.f32 %v1403_v17, %v1363_v10 }
 0x3a2   : > { %1496 = vst [vmem:[%s2532_s21 + $0x28] sm:$0xff] %v1483_v9 }
 0x3a5   : > { %v1444_v19 = vpop.f32.mrf.mxu2  ;;  %v1485_v21 = vpop.f32.mrf.mxu3 }
 0x3a6   : > { %v1445_v20 = vadd.f32 %v1444_v19, %v1404_v18 }
 0x3a8   : > { %v1486_v11 = vadd.f32 %v1485_v21, %v1445_v20 }
 0x3aa   : > { %1497 = vst [vmem:[%s2532_s21 + $0x30] sm:$0xff] %v1486_v11 }
 0x3e7   : > { %v1365_v62 = vpop.f32.mrf.mxu0  ;;  %v1406_v25 = vpop.f32.mrf.mxu1 }
 0x3e8   : > { %v1366_v23 = vadd.f32 %v1365_v62, %v2425_v40 }
 0x3ea   : > { %v1407_v24 = vadd.f32 %v1406_v25, %v1366_v23 }
 0x3f4   : > { %v1447_v26 = vpop.f32.mrf.mxu2  ;;  %v1488_v29 = vpop.f32.mrf.mxu3 }
 0x3f5   : > { %v1448_v28 = vadd.f32 %v1447_v26, %v1407_v24 }
 0x3f7   : > { %v1489_v30 = vadd.f32 %v1488_v29, %v1448_v28 }
 0x3f9   : > { %1498 = vst [vmem:[%s2532_s21 + $0x38] sm:$0xff] %v1489_v30 }
 0x3fa   : > { %2027 = shalt.err (!%p2024_p9)
}
 0x3fb   : > { %s2091_s26 = smov 128   ;;  %s2092_s21 = smov 8  }
 0x3fc   : > { %1720 = dma.vmem_to_hbm [thread:$0]  (%p2230_p13), %s1513_s1, 1024, %s1515_s2, %s1500_s9, %s2091_s26, %s2091_s26, %s2092_s21  }
 0x3fd PF: > { %s1529_s10 = sand.u32 1, %s2066_s27   ;;  %p2605_p10 = scmp.ge.s32.totalorder %s2078_s30, 2 }
 0x3fe   : > { %s1530_s14 = scalar_lea.sflag [#allocation4], %s1529_s10 }
 0x3ff   : > { %p1743_p11 = pnand %p2605_p10, %p2235_p4 }
 0x401   : > { %p1744_p0 = pneg %p1743_p11 }
 0x403   : > { %2061 = dma.done.wait (%p1744_p0), %s1530_s14, 1024  }
 0x404   : > { %2063 = vsyncadd (%p1744_p0), %s1530_s14, 4294966272  ;;  %p24_p2 = scmp.ge.s32.totalorder %s2210_s11, 4   ;;  %s2606_s27 = smov %s2070_s28 }
 0x405   : > { %s2607_s28 = smov %s2074_s29  ;;  %s2608_s29 = smov %s2222_s22 }
 0x406   : > { %s2609_s30 = smov %s2210_s11  ;;  %26 = sbr.rel (!%p24_p2) target bundleno = 11 (0xb), region = 117 }
 0x40b   :  { %1536 = vsyncpa [#allocation3], 1 }
 0x40c   :  { %1538 = vsyncpa [#allocation3 + $0x1], 1 }
 0x40d   :  { %1539 = vsyncpa [#allocation6], 1 }
 0x40e   :  { %1540 = vsyncpa [#allocation9], 1 }
 0x40f   :  { %1541 = vsyncpa [#allocation12], 1 }
 0x410   :  { %1542 = vsyncpa [#allocation4], 1 }
 0x411   :  { %1544 = vsyncpa [#allocation4 + $0x1], 1 }

</bundles_post_ra>
